<compile_context>
chip_gen: v7x
topology: tpu7x:2x2x1
jax: 0.10.0
libtpu: 0.0.40
codegen_flags: <defaults>
</compile_context>

<pallas_src>
import math

import jax
import jax.numpy as jnp
from jax.experimental import pallas as pl
from jax.experimental.pallas import tpu as pltpu

# -------------------- "params.*" hyper-parameters (small, synthetic) ----------
INTEGER_RANGE = 20
EMBEDDING_SIZE = 8
MAX_LIST_LEN = 4
TYPE_VECTOR_LEN = 8
VAR_ENCODER_SIZE = 32          # d_model
NUM_EXAMPLES = 2
STATE_LEN = 8
DENSE_OUTPUT_SIZE = 16
N_HEAD = 4
HEAD_DIM = VAR_ENCODER_SIZE // N_HEAD
DIM_FEEDFORWARD = 64
LAYER_NUM = 2
LN_EPS = 1e-5
VOCAB = INTEGER_RANGE + 1
VAR_IN = MAX_LIST_LEN * EMBEDDING_SIZE + TYPE_VECTOR_LEN   # 40
TOK_WIDTH = TYPE_VECTOR_LEN + MAX_LIST_LEN                 # 12


# ---------------------------------------------------------------------------
# Single fused kernel: embedding (one-hot matmul) + var_encoder + pos-encoding
# + LAYER_NUM transformer encoder layers + final Linear/ReLU + mean(examples).
# One grid step = one batch item; all num_examples sequences handled together.
# ---------------------------------------------------------------------------
def _encoder_fused_kernel(tok_ref, mask_ref, wvv_ref, wvt_ref, vb_ref, pe_ref,
                          wqkv_ref, bqkv_ref, wo_ref, w1_ref, b1_ref, w2_ref,
                          vecs_ref, wenc_ref, benc_ref, o_ref):
    ES = NUM_EXAMPLES * STATE_LEN
    D = VAR_ENCODER_SIZE
    hd = HEAD_DIM
    scale = 1.0 / math.sqrt(hd)

    tok = tok_ref[0]                                          # (ES, 12) int32
    types = tok[:, :TYPE_VECTOR_LEN].astype(jnp.float32)      # (ES, 8)

    # --- embed_state + var_encoder fused (embedding folded into weight) ---
    h = jnp.dot(types, wvt_ref[...], preferred_element_type=jnp.float32)
    lane_ids = jax.lax.broadcasted_iota(jnp.int32, (ES, VOCAB), 1)
    for li in range(MAX_LIST_LEN):
        v = tok[:, TYPE_VECTOR_LEN + li:TYPE_VECTOR_LEN + li + 1]      # (ES, 1)
        onehot = (lane_ids == v).astype(jnp.float32)                   # (ES, VOCAB)
        h = h + jnp.dot(onehot, wvv_ref[li], preferred_element_type=jnp.float32)
    h = jnp.maximum(h + vb_ref[...], 0.0) + pe_ref[...]                # (ES, D)

    def layer_norm(x, g, b):
        mu = jnp.mean(x, axis=-1, keepdims=True)
        xc = x - mu
        var = jnp.mean(xc * xc, axis=-1, keepdims=True)
        return xc * jax.lax.rsqrt(var + LN_EPS) * g + b

    mask = mask_ref[...]                                      # (ES, ES) block-diag

    for l in range(LAYER_NUM):
        vec = vecs_ref[l]                                     # (6, D)
        bo, b2f, g1, be1, g2, be2 = (vec[i:i + 1] for i in range(6))

        # fused QKV projection: one (ES,D)@(D,3D) matmul
        qkv = jnp.dot(h, wqkv_ref[l], preferred_element_type=jnp.float32) \
              + bqkv_ref[l]                                   # (ES, 3D)

        ctx = []
        for hh in range(N_HEAD):
            q = qkv[:, hh * hd:(hh + 1) * hd]
            k = qkv[:, D + hh * hd:D + (hh + 1) * hd]
            v = qkv[:, 2 * D + hh * hd:2 * D + (hh + 1) * hd]
            s = jnp.dot(q, k.T, preferred_element_type=jnp.float32) * scale + mask
            m = jnp.max(s, axis=-1, keepdims=True)
            p = jnp.exp(s - m)
            p = p * pl.reciprocal(jnp.sum(p, axis=-1, keepdims=True), approx=True)
            ctx.append(jnp.dot(p, v, preferred_element_type=jnp.float32))
        attn = jnp.dot(jnp.concatenate(ctx, axis=-1), wo_ref[l],
                       preferred_element_type=jnp.float32) + bo

        # post-norm residual blocks (PyTorch norm_first=False)
        h = layer_norm(h + attn, g1, be1)
        ff = jnp.maximum(jnp.dot(h, w1_ref[l], preferred_element_type=jnp.float32)
                         + b1_ref[l], 0.0)
        ff = jnp.dot(ff, w2_ref[l], preferred_element_type=jnp.float32) + b2f
        h = layer_norm(h + ff, g2, be2)

    # --- final Linear + ReLU + mean over num_examples ---
    y = jnp.maximum(jnp.dot(h, wenc_ref[...], preferred_element_type=jnp.float32)
                    + benc_ref[...], 0.0)                     # (ES, O)
    acc = y[0:STATE_LEN, :]
    for e in range(1, NUM_EXAMPLES):
        acc = acc + y[e * STATE_LEN:(e + 1) * STATE_LEN, :]
    o_ref[0] = acc * (1.0 / NUM_EXAMPLES)


def encoder_forward(x, mask, pk):
    """x: int32 [B, num_examples, state_len, type_vector_len + max_list_len]."""
    B, E, S, F = x.shape
    ES = E * S
    O = DENSE_OUTPUT_SIZE

    tok = x.reshape(B, ES, F).astype(jnp.int32)

    # Block-diagonal expansion of the (S,S) additive mask so one attention over
    # the ES rows of a batch item is exactly per-example attention.
    ex = jnp.arange(ES, dtype=jnp.int32) // S
    same = ex[:, None] == ex[None, :]
    big_mask = jnp.where(same, jnp.tile(mask.astype(jnp.float32), (E, E)), -1e30)

    def full_spec(a):
        shp = a.shape
        return pl.BlockSpec(shp, lambda b, _z=(0,) * len(shp): _z)

    operands = [tok, big_mask, pk["wvv"], pk["wvt"], pk["var_b"], pk["pe_t"],
                pk["wqkv"], pk["bqkv"], pk["wo"], pk["w1"], pk["b1"], pk["w2"],
                pk["vecs"], pk["enc_w"], pk["enc_b"]]
    in_specs = [pl.BlockSpec((1, ES, F), lambda b: (b, 0, 0))] + \
               [full_spec(a) for a in operands[1:]]

    # NOTE: output last dim is O=16 (< 128 lanes); total store is ~1 KiB so the
    # masked-store cost is negligible and we keep the natural (B, S, O) layout.
    return pl.pallas_call(
        _encoder_fused_kernel,
        out_shape=jax.ShapeDtypeStruct((B, S, O), jnp.float32),
        grid=(B,),
        in_specs=in_specs,
        out_specs=pl.BlockSpec((1, S, O), lambda b: (b, 0, 0)),
        compiler_params=pltpu.CompilerParams(dimension_semantics=("parallel",)),
    )(*operands)


# ------------------------------- parameter setup -----------------------------
def make_positional_encoding(seq_len, d_model):
    pos = jnp.arange(seq_len, dtype=jnp.float32)[:, None]
    div = jnp.exp(jnp.arange(0, d_model, 2, dtype=jnp.float32)
                  * (-math.log(10000.0) / d_model))
    pe = jnp.zeros((seq_len, d_model), jnp.float32)
    pe = pe.at[:, 0::2].set(jnp.sin(pos * div))
    pe = pe.at[:, 1::2].set(jnp.cos(pos * div))
    return pe


def init_layer_params(key, d_model, ff):
    ks = jax.random.split(key, 6)
    s = 0.1
    nrm = lambda k, shape: s * jax.random.normal(k, shape, jnp.float32)
    z = lambda n: jnp.zeros((n,), jnp.float32)
    return dict(
        wq=nrm(ks[0], (d_model, d_model)), bq=z(d_model),
        wk=nrm(ks[1], (d_model, d_model)), bk=z(d_model),
        wv=nrm(ks[2], (d_model, d_model)), bv=z(d_model),
        wo=nrm(ks[3], (d_model, d_model)), bo=z(d_model),
        g1=jnp.ones((d_model,), jnp.float32), be1=z(d_model),
        g2=jnp.ones((d_model,), jnp.float32), be2=z(d_model),
        w1=nrm(ks[4], (d_model, ff)), b1=z(ff),
        w2=nrm(ks[5], (ff, d_model)), b2=z(d_model),
    )


def init_params(key):
    ks = jax.random.split(key, 4 + LAYER_NUM)
    s = 0.1
    nrm = lambda k, shape: s * jax.random.normal(k, shape, jnp.float32)
    return dict(
        embedding=nrm(ks[0], (VOCAB, EMBEDDING_SIZE)),
        var_w=nrm(ks[1], (VAR_IN, VAR_ENCODER_SIZE)),
        var_b=jnp.zeros((VAR_ENCODER_SIZE,), jnp.float32),
        pe=make_positional_encoding(STATE_LEN, VAR_ENCODER_SIZE),
        layers=[init_layer_params(ks[4 + i], VAR_ENCODER_SIZE, DIM_FEEDFORWARD)
                for i in range(LAYER_NUM)],
        enc_w=nrm(ks[2], (VAR_ENCODER_SIZE, DENSE_OUTPUT_SIZE)),
        enc_b=jnp.zeros((DENSE_OUTPUT_SIZE,), jnp.float32),
    )


def pack_params(params):
    """Pack torch-like params into the kernel-friendly stacked layout (done once)."""
    emb = params["embedding"]                          # (VOCAB, EMB)
    var_w = params["var_w"]                            # (VAR_IN, D)
    # Fold the embedding table into the value-columns of var_encoder:
    # (onehot @ emb) @ W_l == onehot @ (emb @ W_l)   (exact selection).
    wvv = jnp.stack([emb @ var_w[l * EMBEDDING_SIZE:(l + 1) * EMBEDDING_SIZE]
                     for l in range(MAX_LIST_LEN)])    # (MAX_LIST_LEN, VOCAB, D)
    wvt = var_w[MAX_LIST_LEN * EMBEDDING_SIZE:]        # (TYPE_VECTOR_LEN, D)
    pe_t = jnp.tile(params["pe"], (NUM_EXAMPLES, 1))   # (E*S, D)

    L = params["layers"]
    wqkv = jnp.stack([jnp.concatenate([lw["wq"], lw["wk"], lw["wv"]], axis=1)
                      for lw in L])                    # (L, D, 3D)
    bqkv = jnp.stack([jnp.concatenate([lw["bq"], lw["bk"], lw["bv"]])[None, :]
                      for lw in L])                    # (L, 1, 3D)
    wo = jnp.stack([lw["wo"] for lw in L])             # (L, D, D)
    w1 = jnp.stack([lw["w1"] for lw in L])             # (L, D, FF)
    b1 = jnp.stack([lw["b1"][None, :] for lw in L])    # (L, 1, FF)
    w2 = jnp.stack([lw["w2"] for lw in L])             # (L, FF, D)
    vecs = jnp.stack([jnp.stack([lw["bo"], lw["b2"], lw["g1"], lw["be1"],
                                 lw["g2"], lw["be2"]]) for lw in L])   # (L, 6, D)
    return dict(
        wvv=wvv, wvt=wvt, var_b=params["var_b"][None, :], pe_t=pe_t,
        wqkv=wqkv, bqkv=bqkv, wo=wo, w1=w1, b1=b1, w2=w2, vecs=vecs,
        enc_w=params["enc_w"], enc_b=params["enc_b"][None, :],
    )


if __name__ == "__main__":
    key = jax.random.PRNGKey(0)
    kv, kt, kp = jax.random.split(key, 3)

    B = 2
    values = jax.random.randint(kv, (B, NUM_EXAMPLES, STATE_LEN, MAX_LIST_LEN),
                                0, INTEGER_RANGE + 1, dtype=jnp.int32)
    types = jax.random.randint(kt, (B, NUM_EXAMPLES, STATE_LEN, TYPE_VECTOR_LEN),
                               0, 2, dtype=jnp.int32)
    x = jnp.concatenate([types, values], axis=-1)      # (2, 2, 8, 12) int32

    # causal additive attention mask (0 allowed, -1e9 masked), as src_mask.
    mask = jnp.where(jnp.tril(jnp.ones((STATE_LEN, STATE_LEN), jnp.bool_)),
                     0.0, -1e9).astype(jnp.float32)

    params = init_params(kp)
    packed = pack_params(params)                       # one-time packing (outside jit)

    fwd = jax.jit(encoder_forward)
    out = jax.block_until_ready(fwd(x, mask, packed))
    assert out.shape == (B, STATE_LEN, DENSE_OUTPUT_SIZE), out.shape
    assert bool(jnp.all(jnp.isfinite(out)))
    print("KERNEL_OK")
</pallas_src>

<mosaic_0001>
module attributes {stable_mosaic.version = 11 : i64} {
  func.func @_encoder_fused_kernel(%arg0: i32, %arg1: memref<1x16x12xi32, #tpu.memory_space<vmem>>, %arg2: memref<16x16xf32, #tpu.memory_space<vmem>>, %arg3: memref<4x21x32xf32, #tpu.memory_space<vmem>>, %arg4: memref<8x32xf32, #tpu.memory_space<vmem>>, %arg5: memref<1x32xf32, #tpu.memory_space<vmem>>, %arg6: memref<16x32xf32, #tpu.memory_space<vmem>>, %arg7: memref<2x32x96xf32, #tpu.memory_space<vmem>>, %arg8: memref<2x1x96xf32, #tpu.memory_space<vmem>>, %arg9: memref<2x32x32xf32, #tpu.memory_space<vmem>>, %arg10: memref<2x32x64xf32, #tpu.memory_space<vmem>>, %arg11: memref<2x1x64xf32, #tpu.memory_space<vmem>>, %arg12: memref<2x64x32xf32, #tpu.memory_space<vmem>>, %arg13: memref<2x6x32xf32, #tpu.memory_space<vmem>>, %arg14: memref<32x16xf32, #tpu.memory_space<vmem>>, %arg15: memref<1x16xf32, #tpu.memory_space<vmem>>, %arg16: memref<1x8x16xf32, #tpu.memory_space<vmem>>) attributes {dimension_semantics = [#tpu.dimension_semantics<parallel>], iteration_bounds = array<i64: 2>, scalar_prefetch = 0 : i64, scratch_operands = 0 : i64, tpu.core_type = #tpu.core_type<tc>, window_params = [{transform_indices = @transform_0, window_bounds = array<i64: 1, 16, 12>}, {pipeline_mode = #tpu.pipeline_mode<synchronous>, transform_indices = @transform_1, window_bounds = array<i64: 16, 16>}, {pipeline_mode = #tpu.pipeline_mode<synchronous>, transform_indices = @transform_2, window_bounds = array<i64: 4, 21, 32>}, {pipeline_mode = #tpu.pipeline_mode<synchronous>, transform_indices = @transform_3, window_bounds = array<i64: 8, 32>}, {pipeline_mode = #tpu.pipeline_mode<synchronous>, transform_indices = @transform_4, window_bounds = array<i64: 1, 32>}, {pipeline_mode = #tpu.pipeline_mode<synchronous>, transform_indices = @transform_5, window_bounds = array<i64: 16, 32>}, {pipeline_mode = #tpu.pipeline_mode<synchronous>, transform_indices = @transform_6, window_bounds = array<i64: 2, 32, 96>}, {pipeline_mode = #tpu.pipeline_mode<synchronous>, transform_indices = @transform_7, window_bounds = array<i64: 2, 1, 96>}, {pipeline_mode = #tpu.pipeline_mode<synchronous>, transform_indices = @transform_8, window_bounds = array<i64: 2, 32, 32>}, {pipeline_mode = #tpu.pipeline_mode<synchronous>, transform_indices = @transform_9, window_bounds = array<i64: 2, 32, 64>}, {pipeline_mode = #tpu.pipeline_mode<synchronous>, transform_indices = @transform_10, window_bounds = array<i64: 2, 1, 64>}, {pipeline_mode = #tpu.pipeline_mode<synchronous>, transform_indices = @transform_11, window_bounds = array<i64: 2, 64, 32>}, {pipeline_mode = #tpu.pipeline_mode<synchronous>, transform_indices = @transform_12, window_bounds = array<i64: 2, 6, 32>}, {pipeline_mode = #tpu.pipeline_mode<synchronous>, transform_indices = @transform_13, window_bounds = array<i64: 32, 16>}, {pipeline_mode = #tpu.pipeline_mode<synchronous>, transform_indices = @transform_14, window_bounds = array<i64: 1, 16>}, {transform_indices = @transform_15, window_bounds = array<i64: 1, 8, 16>}]} {
    %c0 = arith.constant 0 : index
    %c0_0 = arith.constant 0 : index
    %c0_1 = arith.constant 0 : index
    %0 = vector.load %arg1[%c0, %c0_0, %c0_1] : memref<1x16x12xi32, #tpu.memory_space<vmem>>, vector<1x16x12xi32>
    %1 = vector.shape_cast %0 : vector<1x16x12xi32> to vector<16x12xi32>
    %2 = vector.extract_strided_slice %1 {offsets = [0, 0], sizes = [16, 8], strides = [1, 1]} : vector<16x12xi32> to vector<16x8xi32>
    %3 = arith.sitofp %2 : vector<16x8xi32> to vector<16x8xf32>
    %c0_2 = arith.constant 0 : index
    %c0_3 = arith.constant 0 : index
    %4 = vector.load %arg4[%c0_2, %c0_3] : memref<8x32xf32, #tpu.memory_space<vmem>>, vector<8x32xf32>
    %cst = arith.constant dense<0.000000e+00> : vector<16x32xf32>
    %5 = tpu.matmul %3, %4, %cst {dimension_numbers = #tpu.dot_dimension_numbers<[1], [0], [0], [1], [0, 0, 1, 1], [], []>} : vector<16x8xf32>, vector<8x32xf32>, vector<16x32xf32> -> vector<16x32xf32>
    %6 = tpu.iota {dimensions = array<i32: 1>} : vector<16x21xi32>
    %7 = vector.extract_strided_slice %1 {offsets = [0, 8], sizes = [16, 1], strides = [1, 1]} : vector<16x12xi32> to vector<16x1xi32>
    %8 = vector.broadcast %7 : vector<16x1xi32> to vector<16x21xi32>
    %9 = arith.cmpi eq, %6, %8 : vector<16x21xi32>
    %10 = arith.extui %9 : vector<16x21xi1> to vector<16x21xi32>
    %11 = arith.sitofp %10 : vector<16x21xi32> to vector<16x21xf32>
    %c0_4 = arith.constant 0 : index
    %c0_5 = arith.constant 0 : index
    %c0_6 = arith.constant 0 : index
    %12 = vector.load %arg3[%c0_4, %c0_5, %c0_6] : memref<4x21x32xf32, #tpu.memory_space<vmem>>, vector<1x21x32xf32>
    %13 = vector.shape_cast %12 : vector<1x21x32xf32> to vector<21x32xf32>
    %cst_7 = arith.constant dense<0.000000e+00> : vector<16x32xf32>
    %14 = tpu.matmul %11, %13, %cst_7 {dimension_numbers = #tpu.dot_dimension_numbers<[1], [0], [0], [1], [0, 0, 1, 1], [], []>} : vector<16x21xf32>, vector<21x32xf32>, vector<16x32xf32> -> vector<16x32xf32>
    %15 = arith.addf %5, %14 : vector<16x32xf32>
    %16 = vector.extract_strided_slice %1 {offsets = [0, 9], sizes = [16, 1], strides = [1, 1]} : vector<16x12xi32> to vector<16x1xi32>
    %17 = vector.broadcast %16 : vector<16x1xi32> to vector<16x21xi32>
    %18 = arith.cmpi eq, %6, %17 : vector<16x21xi32>
    %19 = arith.extui %18 : vector<16x21xi1> to vector<16x21xi32>
    %20 = arith.sitofp %19 : vector<16x21xi32> to vector<16x21xf32>
    %c1 = arith.constant 1 : index
    %c0_8 = arith.constant 0 : index
    %c0_9 = arith.constant 0 : index
    %21 = vector.load %arg3[%c1, %c0_8, %c0_9] : memref<4x21x32xf32, #tpu.memory_space<vmem>>, vector<1x21x32xf32>
    %22 = vector.shape_cast %21 : vector<1x21x32xf32> to vector<21x32xf32>
    %cst_10 = arith.constant dense<0.000000e+00> : vector<16x32xf32>
    %23 = tpu.matmul %20, %22, %cst_10 {dimension_numbers = #tpu.dot_dimension_numbers<[1], [0], [0], [1], [0, 0, 1, 1], [], []>} : vector<16x21xf32>, vector<21x32xf32>, vector<16x32xf32> -> vector<16x32xf32>
    %24 = arith.addf %15, %23 : vector<16x32xf32>
    %25 = vector.extract_strided_slice %1 {offsets = [0, 10], sizes = [16, 1], strides = [1, 1]} : vector<16x12xi32> to vector<16x1xi32>
    %26 = vector.broadcast %25 : vector<16x1xi32> to vector<16x21xi32>
    %27 = arith.cmpi eq, %6, %26 : vector<16x21xi32>
    %28 = arith.extui %27 : vector<16x21xi1> to vector<16x21xi32>
    %29 = arith.sitofp %28 : vector<16x21xi32> to vector<16x21xf32>
    %c2 = arith.constant 2 : index
    %c0_11 = arith.constant 0 : index
    %c0_12 = arith.constant 0 : index
    %30 = vector.load %arg3[%c2, %c0_11, %c0_12] : memref<4x21x32xf32, #tpu.memory_space<vmem>>, vector<1x21x32xf32>
    %31 = vector.shape_cast %30 : vector<1x21x32xf32> to vector<21x32xf32>
    %cst_13 = arith.constant dense<0.000000e+00> : vector<16x32xf32>
    %32 = tpu.matmul %29, %31, %cst_13 {dimension_numbers = #tpu.dot_dimension_numbers<[1], [0], [0], [1], [0, 0, 1, 1], [], []>} : vector<16x21xf32>, vector<21x32xf32>, vector<16x32xf32> -> vector<16x32xf32>
    %33 = arith.addf %24, %32 : vector<16x32xf32>
    %34 = vector.extract_strided_slice %1 {offsets = [0, 11], sizes = [16, 1], strides = [1, 1]} : vector<16x12xi32> to vector<16x1xi32>
    %35 = vector.broadcast %34 : vector<16x1xi32> to vector<16x21xi32>
    %36 = arith.cmpi eq, %6, %35 : vector<16x21xi32>
    %37 = arith.extui %36 : vector<16x21xi1> to vector<16x21xi32>
    %38 = arith.sitofp %37 : vector<16x21xi32> to vector<16x21xf32>
    %c3 = arith.constant 3 : index
    %c0_14 = arith.constant 0 : index
    %c0_15 = arith.constant 0 : index
    %39 = vector.load %arg3[%c3, %c0_14, %c0_15] : memref<4x21x32xf32, #tpu.memory_space<vmem>>, vector<1x21x32xf32>
    %40 = vector.shape_cast %39 : vector<1x21x32xf32> to vector<21x32xf32>
    %cst_16 = arith.constant dense<0.000000e+00> : vector<16x32xf32>
    %41 = tpu.matmul %38, %40, %cst_16 {dimension_numbers = #tpu.dot_dimension_numbers<[1], [0], [0], [1], [0, 0, 1, 1], [], []>} : vector<16x21xf32>, vector<21x32xf32>, vector<16x32xf32> -> vector<16x32xf32>
    %42 = arith.addf %33, %41 : vector<16x32xf32>
    %c0_17 = arith.constant 0 : index
    %c0_18 = arith.constant 0 : index
    %43 = vector.load %arg5[%c0_17, %c0_18] : memref<1x32xf32, #tpu.memory_space<vmem>>, vector<1x32xf32>
    %44 = vector.broadcast %43 : vector<1x32xf32> to vector<16x32xf32>
    %45 = arith.addf %42, %44 : vector<16x32xf32>
    %cst_19 = arith.constant 0.000000e+00 : f32
    %46 = vector.broadcast %cst_19 : f32 to vector<16x32xf32>
    %47 = arith.maximumf %45, %46 : vector<16x32xf32>
    %c0_20 = arith.constant 0 : index
    %c0_21 = arith.constant 0 : index
    %48 = vector.load %arg6[%c0_20, %c0_21] : memref<16x32xf32, #tpu.memory_space<vmem>>, vector<16x32xf32>
    %49 = arith.addf %47, %48 : vector<16x32xf32>
    %c0_22 = arith.constant 0 : index
    %c0_23 = arith.constant 0 : index
    %50 = vector.load %arg2[%c0_22, %c0_23] : memref<16x16xf32, #tpu.memory_space<vmem>>, vector<16x16xf32>
    %c0_24 = arith.constant 0 : index
    %c0_25 = arith.constant 0 : index
    %c0_26 = arith.constant 0 : index
    %51 = vector.load %arg13[%c0_24, %c0_25, %c0_26] : memref<2x6x32xf32, #tpu.memory_space<vmem>>, vector<1x6x32xf32>
    %52 = vector.shape_cast %51 : vector<1x6x32xf32> to vector<6x32xf32>
    %53 = vector.extract_strided_slice %52 {offsets = [0, 0], sizes = [1, 32], strides = [1, 1]} : vector<6x32xf32> to vector<1x32xf32>
    %54 = vector.extract_strided_slice %52 {offsets = [1, 0], sizes = [1, 32], strides = [1, 1]} : vector<6x32xf32> to vector<1x32xf32>
    %55 = vector.extract_strided_slice %52 {offsets = [2, 0], sizes = [1, 32], strides = [1, 1]} : vector<6x32xf32> to vector<1x32xf32>
    %56 = vector.extract_strided_slice %52 {offsets = [3, 0], sizes = [1, 32], strides = [1, 1]} : vector<6x32xf32> to vector<1x32xf32>
    %57 = vector.extract_strided_slice %52 {offsets = [4, 0], sizes = [1, 32], strides = [1, 1]} : vector<6x32xf32> to vector<1x32xf32>
    %58 = vector.extract_strided_slice %52 {offsets = [5, 0], sizes = [1, 32], strides = [1, 1]} : vector<6x32xf32> to vector<1x32xf32>
    %c0_27 = arith.constant 0 : index
    %c0_28 = arith.constant 0 : index
    %c0_29 = arith.constant 0 : index
    %59 = vector.load %arg7[%c0_27, %c0_28, %c0_29] : memref<2x32x96xf32, #tpu.memory_space<vmem>>, vector<1x32x96xf32>
    %60 = vector.shape_cast %59 : vector<1x32x96xf32> to vector<32x96xf32>
    %cst_30 = arith.constant dense<0.000000e+00> : vector<16x96xf32>
    %61 = tpu.matmul %49, %60, %cst_30 {dimension_numbers = #tpu.dot_dimension_numbers<[1], [0], [0], [1], [0, 0, 1, 1], [], []>} : vector<16x32xf32>, vector<32x96xf32>, vector<16x96xf32> -> vector<16x96xf32>
    %c0_31 = arith.constant 0 : index
    %c0_32 = arith.constant 0 : index
    %c0_33 = arith.constant 0 : index
    %62 = vector.load %arg8[%c0_31, %c0_32, %c0_33] : memref<2x1x96xf32, #tpu.memory_space<vmem>>, vector<1x1x96xf32>
    %63 = vector.shape_cast %62 : vector<1x1x96xf32> to vector<1x96xf32>
    %64 = vector.broadcast %63 : vector<1x96xf32> to vector<16x96xf32>
    %65 = arith.addf %61, %64 : vector<16x96xf32>
    %66 = vector.extract_strided_slice %65 {offsets = [0, 0], sizes = [16, 8], strides = [1, 1]} : vector<16x96xf32> to vector<16x8xf32>
    %67 = vector.extract_strided_slice %65 {offsets = [0, 32], sizes = [16, 8], strides = [1, 1]} : vector<16x96xf32> to vector<16x8xf32>
    %68 = vector.extract_strided_slice %65 {offsets = [0, 64], sizes = [16, 8], strides = [1, 1]} : vector<16x96xf32> to vector<16x8xf32>
    %69 = tpu.transpose %67, [1, 0] : vector<16x8xf32> -> vector<8x16xf32>
    %cst_34 = arith.constant dense<0.000000e+00> : vector<16x16xf32>
    %70 = tpu.matmul %66, %69, %cst_34 {dimension_numbers = #tpu.dot_dimension_numbers<[1], [0], [0], [1], [0, 0, 1, 1], [], []>} : vector<16x8xf32>, vector<8x16xf32>, vector<16x16xf32> -> vector<16x16xf32>
    %cst_35 = arith.constant 0.353553385 : f32
    %71 = vector.broadcast %cst_35 : f32 to vector<16x16xf32>
    %72 = arith.mulf %70, %71 : vector<16x16xf32>
    %73 = arith.addf %72, %50 : vector<16x16xf32>
    %cst_36 = arith.constant dense<0xFF800000> : vector<16xf32>
    %74 = vector.multi_reduction <maximumf>, %73, %cst_36 [1] : vector<16x16xf32> to vector<16xf32>
    %75 = vector.shape_cast %74 : vector<16xf32> to vector<16x1xf32>
    %76 = vector.broadcast %75 : vector<16x1xf32> to vector<16x16xf32>
    %77 = arith.subf %73, %76 : vector<16x16xf32>
    %78 = math.exp %77 : vector<16x16xf32>
    %cst_37 = arith.constant dense<0.000000e+00> : vector<16xf32>
    %79 = vector.multi_reduction <add>, %78, %cst_37 [1] : vector<16x16xf32> to vector<16xf32>
    %80 = vector.shape_cast %79 : vector<16xf32> to vector<16x1xf32>
    %81 = tpu.reciprocal %80 {approx = true} : vector<16x1xf32> -> vector<16x1xf32>
    %82 = vector.broadcast %81 : vector<16x1xf32> to vector<16x16xf32>
    %83 = arith.mulf %78, %82 : vector<16x16xf32>
    %cst_38 = arith.constant dense<0.000000e+00> : vector<16x8xf32>
    %84 = tpu.matmul %83, %68, %cst_38 {dimension_numbers = #tpu.dot_dimension_numbers<[1], [0], [0], [1], [0, 0, 1, 1], [], []>} : vector<16x16xf32>, vector<16x8xf32>, vector<16x8xf32> -> vector<16x8xf32>
    %85 = vector.extract_strided_slice %65 {offsets = [0, 8], sizes = [16, 8], strides = [1, 1]} : vector<16x96xf32> to vector<16x8xf32>
    %86 = vector.extract_strided_slice %65 {offsets = [0, 40], sizes = [16, 8], strides = [1, 1]} : vector<16x96xf32> to vector<16x8xf32>
    %87 = vector.extract_strided_slice %65 {offsets = [0, 72], sizes = [16, 8], strides = [1, 1]} : vector<16x96xf32> to vector<16x8xf32>
    %88 = tpu.transpose %86, [1, 0] : vector<16x8xf32> -> vector<8x16xf32>
    %cst_39 = arith.constant dense<0.000000e+00> : vector<16x16xf32>
    %89 = tpu.matmul %85, %88, %cst_39 {dimension_numbers = #tpu.dot_dimension_numbers<[1], [0], [0], [1], [0, 0, 1, 1], [], []>} : vector<16x8xf32>, vector<8x16xf32>, vector<16x16xf32> -> vector<16x16xf32>
    %cst_40 = arith.constant 0.353553385 : f32
    %90 = vector.broadcast %cst_40 : f32 to vector<16x16xf32>
    %91 = arith.mulf %89, %90 : vector<16x16xf32>
    %92 = arith.addf %91, %50 : vector<16x16xf32>
    %cst_41 = arith.constant dense<0xFF800000> : vector<16xf32>
    %93 = vector.multi_reduction <maximumf>, %92, %cst_41 [1] : vector<16x16xf32> to vector<16xf32>
    %94 = vector.shape_cast %93 : vector<16xf32> to vector<16x1xf32>
    %95 = vector.broadcast %94 : vector<16x1xf32> to vector<16x16xf32>
    %96 = arith.subf %92, %95 : vector<16x16xf32>
    %97 = math.exp %96 : vector<16x16xf32>
    %cst_42 = arith.constant dense<0.000000e+00> : vector<16xf32>
    %98 = vector.multi_reduction <add>, %97, %cst_42 [1] : vector<16x16xf32> to vector<16xf32>
    %99 = vector.shape_cast %98 : vector<16xf32> to vector<16x1xf32>
    %100 = tpu.reciprocal %99 {approx = true} : vector<16x1xf32> -> vector<16x1xf32>
    %101 = vector.broadcast %100 : vector<16x1xf32> to vector<16x16xf32>
    %102 = arith.mulf %97, %101 : vector<16x16xf32>
    %cst_43 = arith.constant dense<0.000000e+00> : vector<16x8xf32>
    %103 = tpu.matmul %102, %87, %cst_43 {dimension_numbers = #tpu.dot_dimension_numbers<[1], [0], [0], [1], [0, 0, 1, 1], [], []>} : vector<16x16xf32>, vector<16x8xf32>, vector<16x8xf32> -> vector<16x8xf32>
    %104 = vector.extract_strided_slice %65 {offsets = [0, 16], sizes = [16, 8], strides = [1, 1]} : vector<16x96xf32> to vector<16x8xf32>
    %105 = vector.extract_strided_slice %65 {offsets = [0, 48], sizes = [16, 8], strides = [1, 1]} : vector<16x96xf32> to vector<16x8xf32>
    %106 = vector.extract_strided_slice %65 {offsets = [0, 80], sizes = [16, 8], strides = [1, 1]} : vector<16x96xf32> to vector<16x8xf32>
    %107 = tpu.transpose %105, [1, 0] : vector<16x8xf32> -> vector<8x16xf32>
    %cst_44 = arith.constant dense<0.000000e+00> : vector<16x16xf32>
    %108 = tpu.matmul %104, %107, %cst_44 {dimension_numbers = #tpu.dot_dimension_numbers<[1], [0], [0], [1], [0, 0, 1, 1], [], []>} : vector<16x8xf32>, vector<8x16xf32>, vector<16x16xf32> -> vector<16x16xf32>
    %cst_45 = arith.constant 0.353553385 : f32
    %109 = vector.broadcast %cst_45 : f32 to vector<16x16xf32>
    %110 = arith.mulf %108, %109 : vector<16x16xf32>
    %111 = arith.addf %110, %50 : vector<16x16xf32>
    %cst_46 = arith.constant dense<0xFF800000> : vector<16xf32>
    %112 = vector.multi_reduction <maximumf>, %111, %cst_46 [1] : vector<16x16xf32> to vector<16xf32>
    %113 = vector.shape_cast %112 : vector<16xf32> to vector<16x1xf32>
    %114 = vector.broadcast %113 : vector<16x1xf32> to vector<16x16xf32>
    %115 = arith.subf %111, %114 : vector<16x16xf32>
    %116 = math.exp %115 : vector<16x16xf32>
    %cst_47 = arith.constant dense<0.000000e+00> : vector<16xf32>
    %117 = vector.multi_reduction <add>, %116, %cst_47 [1] : vector<16x16xf32> to vector<16xf32>
    %118 = vector.shape_cast %117 : vector<16xf32> to vector<16x1xf32>
    %119 = tpu.reciprocal %118 {approx = true} : vector<16x1xf32> -> vector<16x1xf32>
    %120 = vector.broadcast %119 : vector<16x1xf32> to vector<16x16xf32>
    %121 = arith.mulf %116, %120 : vector<16x16xf32>
    %cst_48 = arith.constant dense<0.000000e+00> : vector<16x8xf32>
    %122 = tpu.matmul %121, %106, %cst_48 {dimension_numbers = #tpu.dot_dimension_numbers<[1], [0], [0], [1], [0, 0, 1, 1], [], []>} : vector<16x16xf32>, vector<16x8xf32>, vector<16x8xf32> -> vector<16x8xf32>
    %123 = vector.extract_strided_slice %65 {offsets = [0, 24], sizes = [16, 8], strides = [1, 1]} : vector<16x96xf32> to vector<16x8xf32>
    %124 = vector.extract_strided_slice %65 {offsets = [0, 56], sizes = [16, 8], strides = [1, 1]} : vector<16x96xf32> to vector<16x8xf32>
    %125 = vector.extract_strided_slice %65 {offsets = [0, 88], sizes = [16, 8], strides = [1, 1]} : vector<16x96xf32> to vector<16x8xf32>
    %126 = tpu.transpose %124, [1, 0] : vector<16x8xf32> -> vector<8x16xf32>
    %cst_49 = arith.constant dense<0.000000e+00> : vector<16x16xf32>
    %127 = tpu.matmul %123, %126, %cst_49 {dimension_numbers = #tpu.dot_dimension_numbers<[1], [0], [0], [1], [0, 0, 1, 1], [], []>} : vector<16x8xf32>, vector<8x16xf32>, vector<16x16xf32> -> vector<16x16xf32>
    %cst_50 = arith.constant 0.353553385 : f32
    %128 = vector.broadcast %cst_50 : f32 to vector<16x16xf32>
    %129 = arith.mulf %127, %128 : vector<16x16xf32>
    %130 = arith.addf %129, %50 : vector<16x16xf32>
    %cst_51 = arith.constant dense<0xFF800000> : vector<16xf32>
    %131 = vector.multi_reduction <maximumf>, %130, %cst_51 [1] : vector<16x16xf32> to vector<16xf32>
    %132 = vector.shape_cast %131 : vector<16xf32> to vector<16x1xf32>
    %133 = vector.broadcast %132 : vector<16x1xf32> to vector<16x16xf32>
    %134 = arith.subf %130, %133 : vector<16x16xf32>
    %135 = math.exp %134 : vector<16x16xf32>
    %cst_52 = arith.constant dense<0.000000e+00> : vector<16xf32>
    %136 = vector.multi_reduction <add>, %135, %cst_52 [1] : vector<16x16xf32> to vector<16xf32>
    %137 = vector.shape_cast %136 : vector<16xf32> to vector<16x1xf32>
    %138 = tpu.reciprocal %137 {approx = true} : vector<16x1xf32> -> vector<16x1xf32>
    %139 = vector.broadcast %138 : vector<16x1xf32> to vector<16x16xf32>
    %140 = arith.mulf %135, %139 : vector<16x16xf32>
    %cst_53 = arith.constant dense<0.000000e+00> : vector<16x8xf32>
    %141 = tpu.matmul %140, %125, %cst_53 {dimension_numbers = #tpu.dot_dimension_numbers<[1], [0], [0], [1], [0, 0, 1, 1], [], []>} : vector<16x16xf32>, vector<16x8xf32>, vector<16x8xf32> -> vector<16x8xf32>
    %142 = tpu.concatenate %84, %103, %122, %141 in 1 : vector<16x8xf32>, vector<16x8xf32>, vector<16x8xf32>, vector<16x8xf32> -> vector<16x32xf32>
    %c0_54 = arith.constant 0 : index
    %c0_55 = arith.constant 0 : index
    %c0_56 = arith.constant 0 : index
    %143 = vector.load %arg9[%c0_54, %c0_55, %c0_56] : memref<2x32x32xf32, #tpu.memory_space<vmem>>, vector<1x32x32xf32>
    %144 = vector.shape_cast %143 : vector<1x32x32xf32> to vector<32x32xf32>
    %cst_57 = arith.constant dense<0.000000e+00> : vector<16x32xf32>
    %145 = tpu.matmul %142, %144, %cst_57 {dimension_numbers = #tpu.dot_dimension_numbers<[1], [0], [0], [1], [0, 0, 1, 1], [], []>} : vector<16x32xf32>, vector<32x32xf32>, vector<16x32xf32> -> vector<16x32xf32>
    %146 = vector.broadcast %53 : vector<1x32xf32> to vector<16x32xf32>
    %147 = arith.addf %145, %146 : vector<16x32xf32>
    %148 = arith.addf %49, %147 : vector<16x32xf32>
    %cst_58 = arith.constant dense<0.000000e+00> : vector<16xf32>
    %149 = vector.multi_reduction <add>, %148, %cst_58 [1] : vector<16x32xf32> to vector<16xf32>
    %150 = vector.shape_cast %149 : vector<16xf32> to vector<16x1xf32>
    %cst_59 = arith.constant 3.200000e+01 : f32
    %151 = vector.broadcast %cst_59 : f32 to vector<16x1xf32>
    %152 = arith.divf %150, %151 : vector<16x1xf32>
    %153 = vector.broadcast %152 : vector<16x1xf32> to vector<16x32xf32>
    %154 = arith.subf %148, %153 : vector<16x32xf32>
    %155 = arith.mulf %154, %154 : vector<16x32xf32>
    %cst_60 = arith.constant dense<0.000000e+00> : vector<16xf32>
    %156 = vector.multi_reduction <add>, %155, %cst_60 [1] : vector<16x32xf32> to vector<16xf32>
    %157 = vector.shape_cast %156 : vector<16xf32> to vector<16x1xf32>
    %cst_61 = arith.constant 3.200000e+01 : f32
    %158 = vector.broadcast %cst_61 : f32 to vector<16x1xf32>
    %159 = arith.divf %157, %158 : vector<16x1xf32>
    %cst_62 = arith.constant 9.99999974E-6 : f32
    %160 = vector.broadcast %cst_62 : f32 to vector<16x1xf32>
    %161 = arith.addf %159, %160 : vector<16x1xf32>
    %162 = math.rsqrt %161 : vector<16x1xf32>
    %163 = vector.broadcast %162 : vector<16x1xf32> to vector<16x32xf32>
    %164 = arith.mulf %154, %163 : vector<16x32xf32>
    %165 = vector.broadcast %55 : vector<1x32xf32> to vector<16x32xf32>
    %166 = arith.mulf %164, %165 : vector<16x32xf32>
    %167 = vector.broadcast %56 : vector<1x32xf32> to vector<16x32xf32>
    %168 = arith.addf %166, %167 : vector<16x32xf32>
    %c0_63 = arith.constant 0 : index
    %c0_64 = arith.constant 0 : index
    %c0_65 = arith.constant 0 : index
    %169 = vector.load %arg10[%c0_63, %c0_64, %c0_65] : memref<2x32x64xf32, #tpu.memory_space<vmem>>, vector<1x32x64xf32>
    %170 = vector.shape_cast %169 : vector<1x32x64xf32> to vector<32x64xf32>
    %cst_66 = arith.constant dense<0.000000e+00> : vector<16x64xf32>
    %171 = tpu.matmul %168, %170, %cst_66 {dimension_numbers = #tpu.dot_dimension_numbers<[1], [0], [0], [1], [0, 0, 1, 1], [], []>} : vector<16x32xf32>, vector<32x64xf32>, vector<16x64xf32> -> vector<16x64xf32>
    %c0_67 = arith.constant 0 : index
    %c0_68 = arith.constant 0 : index
    %c0_69 = arith.constant 0 : index
    %172 = vector.load %arg11[%c0_67, %c0_68, %c0_69] : memref<2x1x64xf32, #tpu.memory_space<vmem>>, vector<1x1x64xf32>
    %173 = vector.shape_cast %172 : vector<1x1x64xf32> to vector<1x64xf32>
    %174 = vector.broadcast %173 : vector<1x64xf32> to vector<16x64xf32>
    %175 = arith.addf %171, %174 : vector<16x64xf32>
    %cst_70 = arith.constant 0.000000e+00 : f32
    %176 = vector.broadcast %cst_70 : f32 to vector<16x64xf32>
    %177 = arith.maximumf %175, %176 : vector<16x64xf32>
    %c0_71 = arith.constant 0 : index
    %c0_72 = arith.constant 0 : index
    %c0_73 = arith.constant 0 : index
    %178 = vector.load %arg12[%c0_71, %c0_72, %c0_73] : memref<2x64x32xf32, #tpu.memory_space<vmem>>, vector<1x64x32xf32>
    %179 = vector.shape_cast %178 : vector<1x64x32xf32> to vector<64x32xf32>
    %cst_74 = arith.constant dense<0.000000e+00> : vector<16x32xf32>
    %180 = tpu.matmul %177, %179, %cst_74 {dimension_numbers = #tpu.dot_dimension_numbers<[1], [0], [0], [1], [0, 0, 1, 1], [], []>} : vector<16x64xf32>, vector<64x32xf32>, vector<16x32xf32> -> vector<16x32xf32>
    %181 = vector.broadcast %54 : vector<1x32xf32> to vector<16x32xf32>
    %182 = arith.addf %180, %181 : vector<16x32xf32>
    %183 = arith.addf %168, %182 : vector<16x32xf32>
    %cst_75 = arith.constant dense<0.000000e+00> : vector<16xf32>
    %184 = vector.multi_reduction <add>, %183, %cst_75 [1] : vector<16x32xf32> to vector<16xf32>
    %185 = vector.shape_cast %184 : vector<16xf32> to vector<16x1xf32>
    %cst_76 = arith.constant 3.200000e+01 : f32
    %186 = vector.broadcast %cst_76 : f32 to vector<16x1xf32>
    %187 = arith.divf %185, %186 : vector<16x1xf32>
    %188 = vector.broadcast %187 : vector<16x1xf32> to vector<16x32xf32>
    %189 = arith.subf %183, %188 : vector<16x32xf32>
    %190 = arith.mulf %189, %189 : vector<16x32xf32>
    %cst_77 = arith.constant dense<0.000000e+00> : vector<16xf32>
    %191 = vector.multi_reduction <add>, %190, %cst_77 [1] : vector<16x32xf32> to vector<16xf32>
    %192 = vector.shape_cast %191 : vector<16xf32> to vector<16x1xf32>
    %cst_78 = arith.constant 3.200000e+01 : f32
    %193 = vector.broadcast %cst_78 : f32 to vector<16x1xf32>
    %194 = arith.divf %192, %193 : vector<16x1xf32>
    %cst_79 = arith.constant 9.99999974E-6 : f32
    %195 = vector.broadcast %cst_79 : f32 to vector<16x1xf32>
    %196 = arith.addf %194, %195 : vector<16x1xf32>
    %197 = math.rsqrt %196 : vector<16x1xf32>
    %198 = vector.broadcast %197 : vector<16x1xf32> to vector<16x32xf32>
    %199 = arith.mulf %189, %198 : vector<16x32xf32>
    %200 = vector.broadcast %57 : vector<1x32xf32> to vector<16x32xf32>
    %201 = arith.mulf %199, %200 : vector<16x32xf32>
    %202 = vector.broadcast %58 : vector<1x32xf32> to vector<16x32xf32>
    %203 = arith.addf %201, %202 : vector<16x32xf32>
    %c1_80 = arith.constant 1 : index
    %c0_81 = arith.constant 0 : index
    %c0_82 = arith.constant 0 : index
    %204 = vector.load %arg13[%c1_80, %c0_81, %c0_82] : memref<2x6x32xf32, #tpu.memory_space<vmem>>, vector<1x6x32xf32>
    %205 = vector.shape_cast %204 : vector<1x6x32xf32> to vector<6x32xf32>
    %206 = vector.extract_strided_slice %205 {offsets = [0, 0], sizes = [1, 32], strides = [1, 1]} : vector<6x32xf32> to vector<1x32xf32>
    %207 = vector.extract_strided_slice %205 {offsets = [1, 0], sizes = [1, 32], strides = [1, 1]} : vector<6x32xf32> to vector<1x32xf32>
    %208 = vector.extract_strided_slice %205 {offsets = [2, 0], sizes = [1, 32], strides = [1, 1]} : vector<6x32xf32> to vector<1x32xf32>
    %209 = vector.extract_strided_slice %205 {offsets = [3, 0], sizes = [1, 32], strides = [1, 1]} : vector<6x32xf32> to vector<1x32xf32>
    %210 = vector.extract_strided_slice %205 {offsets = [4, 0], sizes = [1, 32], strides = [1, 1]} : vector<6x32xf32> to vector<1x32xf32>
    %211 = vector.extract_strided_slice %205 {offsets = [5, 0], sizes = [1, 32], strides = [1, 1]} : vector<6x32xf32> to vector<1x32xf32>
    %c1_83 = arith.constant 1 : index
    %c0_84 = arith.constant 0 : index
    %c0_85 = arith.constant 0 : index
    %212 = vector.load %arg7[%c1_83, %c0_84, %c0_85] : memref<2x32x96xf32, #tpu.memory_space<vmem>>, vector<1x32x96xf32>
    %213 = vector.shape_cast %212 : vector<1x32x96xf32> to vector<32x96xf32>
    %cst_86 = arith.constant dense<0.000000e+00> : vector<16x96xf32>
    %214 = tpu.matmul %203, %213, %cst_86 {dimension_numbers = #tpu.dot_dimension_numbers<[1], [0], [0], [1], [0, 0, 1, 1], [], []>} : vector<16x32xf32>, vector<32x96xf32>, vector<16x96xf32> -> vector<16x96xf32>
    %c1_87 = arith.constant 1 : index
    %c0_88 = arith.constant 0 : index
    %c0_89 = arith.constant 0 : index
    %215 = vector.load %arg8[%c1_87, %c0_88, %c0_89] : memref<2x1x96xf32, #tpu.memory_space<vmem>>, vector<1x1x96xf32>
    %216 = vector.shape_cast %215 : vector<1x1x96xf32> to vector<1x96xf32>
    %217 = vector.broadcast %216 : vector<1x96xf32> to vector<16x96xf32>
    %218 = arith.addf %214, %217 : vector<16x96xf32>
    %219 = vector.extract_strided_slice %218 {offsets = [0, 0], sizes = [16, 8], strides = [1, 1]} : vector<16x96xf32> to vector<16x8xf32>
    %220 = vector.extract_strided_slice %218 {offsets = [0, 32], sizes = [16, 8], strides = [1, 1]} : vector<16x96xf32> to vector<16x8xf32>
    %221 = vector.extract_strided_slice %218 {offsets = [0, 64], sizes = [16, 8], strides = [1, 1]} : vector<16x96xf32> to vector<16x8xf32>
    %222 = tpu.transpose %220, [1, 0] : vector<16x8xf32> -> vector<8x16xf32>
    %cst_90 = arith.constant dense<0.000000e+00> : vector<16x16xf32>
    %223 = tpu.matmul %219, %222, %cst_90 {dimension_numbers = #tpu.dot_dimension_numbers<[1], [0], [0], [1], [0, 0, 1, 1], [], []>} : vector<16x8xf32>, vector<8x16xf32>, vector<16x16xf32> -> vector<16x16xf32>
    %cst_91 = arith.constant 0.353553385 : f32
    %224 = vector.broadcast %cst_91 : f32 to vector<16x16xf32>
    %225 = arith.mulf %223, %224 : vector<16x16xf32>
    %226 = arith.addf %225, %50 : vector<16x16xf32>
    %cst_92 = arith.constant dense<0xFF800000> : vector<16xf32>
    %227 = vector.multi_reduction <maximumf>, %226, %cst_92 [1] : vector<16x16xf32> to vector<16xf32>
    %228 = vector.shape_cast %227 : vector<16xf32> to vector<16x1xf32>
    %229 = vector.broadcast %228 : vector<16x1xf32> to vector<16x16xf32>
    %230 = arith.subf %226, %229 : vector<16x16xf32>
    %231 = math.exp %230 : vector<16x16xf32>
    %cst_93 = arith.constant dense<0.000000e+00> : vector<16xf32>
    %232 = vector.multi_reduction <add>, %231, %cst_93 [1] : vector<16x16xf32> to vector<16xf32>
    %233 = vector.shape_cast %232 : vector<16xf32> to vector<16x1xf32>
    %234 = tpu.reciprocal %233 {approx = true} : vector<16x1xf32> -> vector<16x1xf32>
    %235 = vector.broadcast %234 : vector<16x1xf32> to vector<16x16xf32>
    %236 = arith.mulf %231, %235 : vector<16x16xf32>
    %cst_94 = arith.constant dense<0.000000e+00> : vector<16x8xf32>
    %237 = tpu.matmul %236, %221, %cst_94 {dimension_numbers = #tpu.dot_dimension_numbers<[1], [0], [0], [1], [0, 0, 1, 1], [], []>} : vector<16x16xf32>, vector<16x8xf32>, vector<16x8xf32> -> vector<16x8xf32>
    %238 = vector.extract_strided_slice %218 {offsets = [0, 8], sizes = [16, 8], strides = [1, 1]} : vector<16x96xf32> to vector<16x8xf32>
    %239 = vector.extract_strided_slice %218 {offsets = [0, 40], sizes = [16, 8], strides = [1, 1]} : vector<16x96xf32> to vector<16x8xf32>
    %240 = vector.extract_strided_slice %218 {offsets = [0, 72], sizes = [16, 8], strides = [1, 1]} : vector<16x96xf32> to vector<16x8xf32>
    %241 = tpu.transpose %239, [1, 0] : vector<16x8xf32> -> vector<8x16xf32>
    %cst_95 = arith.constant dense<0.000000e+00> : vector<16x16xf32>
    %242 = tpu.matmul %238, %241, %cst_95 {dimension_numbers = #tpu.dot_dimension_numbers<[1], [0], [0], [1], [0, 0, 1, 1], [], []>} : vector<16x8xf32>, vector<8x16xf32>, vector<16x16xf32> -> vector<16x16xf32>
    %cst_96 = arith.constant 0.353553385 : f32
    %243 = vector.broadcast %cst_96 : f32 to vector<16x16xf32>
    %244 = arith.mulf %242, %243 : vector<16x16xf32>
    %245 = arith.addf %244, %50 : vector<16x16xf32>
    %cst_97 = arith.constant dense<0xFF800000> : vector<16xf32>
    %246 = vector.multi_reduction <maximumf>, %245, %cst_97 [1] : vector<16x16xf32> to vector<16xf32>
    %247 = vector.shape_cast %246 : vector<16xf32> to vector<16x1xf32>
    %248 = vector.broadcast %247 : vector<16x1xf32> to vector<16x16xf32>
    %249 = arith.subf %245, %248 : vector<16x16xf32>
    %250 = math.exp %249 : vector<16x16xf32>
    %cst_98 = arith.constant dense<0.000000e+00> : vector<16xf32>
    %251 = vector.multi_reduction <add>, %250, %cst_98 [1] : vector<16x16xf32> to vector<16xf32>
    %252 = vector.shape_cast %251 : vector<16xf32> to vector<16x1xf32>
    %253 = tpu.reciprocal %252 {approx = true} : vector<16x1xf32> -> vector<16x1xf32>
    %254 = vector.broadcast %253 : vector<16x1xf32> to vector<16x16xf32>
    %255 = arith.mulf %250, %254 : vector<16x16xf32>
    %cst_99 = arith.constant dense<0.000000e+00> : vector<16x8xf32>
    %256 = tpu.matmul %255, %240, %cst_99 {dimension_numbers = #tpu.dot_dimension_numbers<[1], [0], [0], [1], [0, 0, 1, 1], [], []>} : vector<16x16xf32>, vector<16x8xf32>, vector<16x8xf32> -> vector<16x8xf32>
    %257 = vector.extract_strided_slice %218 {offsets = [0, 16], sizes = [16, 8], strides = [1, 1]} : vector<16x96xf32> to vector<16x8xf32>
    %258 = vector.extract_strided_slice %218 {offsets = [0, 48], sizes = [16, 8], strides = [1, 1]} : vector<16x96xf32> to vector<16x8xf32>
    %259 = vector.extract_strided_slice %218 {offsets = [0, 80], sizes = [16, 8], strides = [1, 1]} : vector<16x96xf32> to vector<16x8xf32>
    %260 = tpu.transpose %258, [1, 0] : vector<16x8xf32> -> vector<8x16xf32>
    %cst_100 = arith.constant dense<0.000000e+00> : vector<16x16xf32>
    %261 = tpu.matmul %257, %260, %cst_100 {dimension_numbers = #tpu.dot_dimension_numbers<[1], [0], [0], [1], [0, 0, 1, 1], [], []>} : vector<16x8xf32>, vector<8x16xf32>, vector<16x16xf32> -> vector<16x16xf32>
    %cst_101 = arith.constant 0.353553385 : f32
    %262 = vector.broadcast %cst_101 : f32 to vector<16x16xf32>
    %263 = arith.mulf %261, %262 : vector<16x16xf32>
    %264 = arith.addf %263, %50 : vector<16x16xf32>
    %cst_102 = arith.constant dense<0xFF800000> : vector<16xf32>
    %265 = vector.multi_reduction <maximumf>, %264, %cst_102 [1] : vector<16x16xf32> to vector<16xf32>
    %266 = vector.shape_cast %265 : vector<16xf32> to vector<16x1xf32>
    %267 = vector.broadcast %266 : vector<16x1xf32> to vector<16x16xf32>
    %268 = arith.subf %264, %267 : vector<16x16xf32>
    %269 = math.exp %268 : vector<16x16xf32>
    %cst_103 = arith.constant dense<0.000000e+00> : vector<16xf32>
    %270 = vector.multi_reduction <add>, %269, %cst_103 [1] : vector<16x16xf32> to vector<16xf32>
    %271 = vector.shape_cast %270 : vector<16xf32> to vector<16x1xf32>
    %272 = tpu.reciprocal %271 {approx = true} : vector<16x1xf32> -> vector<16x1xf32>
    %273 = vector.broadcast %272 : vector<16x1xf32> to vector<16x16xf32>
    %274 = arith.mulf %269, %273 : vector<16x16xf32>
    %cst_104 = arith.constant dense<0.000000e+00> : vector<16x8xf32>
    %275 = tpu.matmul %274, %259, %cst_104 {dimension_numbers = #tpu.dot_dimension_numbers<[1], [0], [0], [1], [0, 0, 1, 1], [], []>} : vector<16x16xf32>, vector<16x8xf32>, vector<16x8xf32> -> vector<16x8xf32>
    %276 = vector.extract_strided_slice %218 {offsets = [0, 24], sizes = [16, 8], strides = [1, 1]} : vector<16x96xf32> to vector<16x8xf32>
    %277 = vector.extract_strided_slice %218 {offsets = [0, 56], sizes = [16, 8], strides = [1, 1]} : vector<16x96xf32> to vector<16x8xf32>
    %278 = vector.extract_strided_slice %218 {offsets = [0, 88], sizes = [16, 8], strides = [1, 1]} : vector<16x96xf32> to vector<16x8xf32>
    %279 = tpu.transpose %277, [1, 0] : vector<16x8xf32> -> vector<8x16xf32>
    %cst_105 = arith.constant dense<0.000000e+00> : vector<16x16xf32>
    %280 = tpu.matmul %276, %279, %cst_105 {dimension_numbers = #tpu.dot_dimension_numbers<[1], [0], [0], [1], [0, 0, 1, 1], [], []>} : vector<16x8xf32>, vector<8x16xf32>, vector<16x16xf32> -> vector<16x16xf32>
    %cst_106 = arith.constant 0.353553385 : f32
    %281 = vector.broadcast %cst_106 : f32 to vector<16x16xf32>
    %282 = arith.mulf %280, %281 : vector<16x16xf32>
    %283 = arith.addf %282, %50 : vector<16x16xf32>
    %cst_107 = arith.constant dense<0xFF800000> : vector<16xf32>
    %284 = vector.multi_reduction <maximumf>, %283, %cst_107 [1] : vector<16x16xf32> to vector<16xf32>
    %285 = vector.shape_cast %284 : vector<16xf32> to vector<16x1xf32>
    %286 = vector.broadcast %285 : vector<16x1xf32> to vector<16x16xf32>
    %287 = arith.subf %283, %286 : vector<16x16xf32>
    %288 = math.exp %287 : vector<16x16xf32>
    %cst_108 = arith.constant dense<0.000000e+00> : vector<16xf32>
    %289 = vector.multi_reduction <add>, %288, %cst_108 [1] : vector<16x16xf32> to vector<16xf32>
    %290 = vector.shape_cast %289 : vector<16xf32> to vector<16x1xf32>
    %291 = tpu.reciprocal %290 {approx = true} : vector<16x1xf32> -> vector<16x1xf32>
    %292 = vector.broadcast %291 : vector<16x1xf32> to vector<16x16xf32>
    %293 = arith.mulf %288, %292 : vector<16x16xf32>
    %cst_109 = arith.constant dense<0.000000e+00> : vector<16x8xf32>
    %294 = tpu.matmul %293, %278, %cst_109 {dimension_numbers = #tpu.dot_dimension_numbers<[1], [0], [0], [1], [0, 0, 1, 1], [], []>} : vector<16x16xf32>, vector<16x8xf32>, vector<16x8xf32> -> vector<16x8xf32>
    %295 = tpu.concatenate %237, %256, %275, %294 in 1 : vector<16x8xf32>, vector<16x8xf32>, vector<16x8xf32>, vector<16x8xf32> -> vector<16x32xf32>
    %c1_110 = arith.constant 1 : index
    %c0_111 = arith.constant 0 : index
    %c0_112 = arith.constant 0 : index
    %296 = vector.load %arg9[%c1_110, %c0_111, %c0_112] : memref<2x32x32xf32, #tpu.memory_space<vmem>>, vector<1x32x32xf32>
    %297 = vector.shape_cast %296 : vector<1x32x32xf32> to vector<32x32xf32>
    %cst_113 = arith.constant dense<0.000000e+00> : vector<16x32xf32>
    %298 = tpu.matmul %295, %297, %cst_113 {dimension_numbers = #tpu.dot_dimension_numbers<[1], [0], [0], [1], [0, 0, 1, 1], [], []>} : vector<16x32xf32>, vector<32x32xf32>, vector<16x32xf32> -> vector<16x32xf32>
    %299 = vector.broadcast %206 : vector<1x32xf32> to vector<16x32xf32>
    %300 = arith.addf %298, %299 : vector<16x32xf32>
    %301 = arith.addf %203, %300 : vector<16x32xf32>
    %cst_114 = arith.constant dense<0.000000e+00> : vector<16xf32>
    %302 = vector.multi_reduction <add>, %301, %cst_114 [1] : vector<16x32xf32> to vector<16xf32>
    %303 = vector.shape_cast %302 : vector<16xf32> to vector<16x1xf32>
    %cst_115 = arith.constant 3.200000e+01 : f32
    %304 = vector.broadcast %cst_115 : f32 to vector<16x1xf32>
    %305 = arith.divf %303, %304 : vector<16x1xf32>
    %306 = vector.broadcast %305 : vector<16x1xf32> to vector<16x32xf32>
    %307 = arith.subf %301, %306 : vector<16x32xf32>
    %308 = arith.mulf %307, %307 : vector<16x32xf32>
    %cst_116 = arith.constant dense<0.000000e+00> : vector<16xf32>
    %309 = vector.multi_reduction <add>, %308, %cst_116 [1] : vector<16x32xf32> to vector<16xf32>
    %310 = vector.shape_cast %309 : vector<16xf32> to vector<16x1xf32>
    %cst_117 = arith.constant 3.200000e+01 : f32
    %311 = vector.broadcast %cst_117 : f32 to vector<16x1xf32>
    %312 = arith.divf %310, %311 : vector<16x1xf32>
    %cst_118 = arith.constant 9.99999974E-6 : f32
    %313 = vector.broadcast %cst_118 : f32 to vector<16x1xf32>
    %314 = arith.addf %312, %313 : vector<16x1xf32>
    %315 = math.rsqrt %314 : vector<16x1xf32>
    %316 = vector.broadcast %315 : vector<16x1xf32> to vector<16x32xf32>
    %317 = arith.mulf %307, %316 : vector<16x32xf32>
    %318 = vector.broadcast %208 : vector<1x32xf32> to vector<16x32xf32>
    %319 = arith.mulf %317, %318 : vector<16x32xf32>
    %320 = vector.broadcast %209 : vector<1x32xf32> to vector<16x32xf32>
    %321 = arith.addf %319, %320 : vector<16x32xf32>
    %c1_119 = arith.constant 1 : index
    %c0_120 = arith.constant 0 : index
    %c0_121 = arith.constant 0 : index
    %322 = vector.load %arg10[%c1_119, %c0_120, %c0_121] : memref<2x32x64xf32, #tpu.memory_space<vmem>>, vector<1x32x64xf32>
    %323 = vector.shape_cast %322 : vector<1x32x64xf32> to vector<32x64xf32>
    %cst_122 = arith.constant dense<0.000000e+00> : vector<16x64xf32>
    %324 = tpu.matmul %321, %323, %cst_122 {dimension_numbers = #tpu.dot_dimension_numbers<[1], [0], [0], [1], [0, 0, 1, 1], [], []>} : vector<16x32xf32>, vector<32x64xf32>, vector<16x64xf32> -> vector<16x64xf32>
    %c1_123 = arith.constant 1 : index
    %c0_124 = arith.constant 0 : index
    %c0_125 = arith.constant 0 : index
    %325 = vector.load %arg11[%c1_123, %c0_124, %c0_125] : memref<2x1x64xf32, #tpu.memory_space<vmem>>, vector<1x1x64xf32>
    %326 = vector.shape_cast %325 : vector<1x1x64xf32> to vector<1x64xf32>
    %327 = vector.broadcast %326 : vector<1x64xf32> to vector<16x64xf32>
    %328 = arith.addf %324, %327 : vector<16x64xf32>
    %cst_126 = arith.constant 0.000000e+00 : f32
    %329 = vector.broadcast %cst_126 : f32 to vector<16x64xf32>
    %330 = arith.maximumf %328, %329 : vector<16x64xf32>
    %c1_127 = arith.constant 1 : index
    %c0_128 = arith.constant 0 : index
    %c0_129 = arith.constant 0 : index
    %331 = vector.load %arg12[%c1_127, %c0_128, %c0_129] : memref<2x64x32xf32, #tpu.memory_space<vmem>>, vector<1x64x32xf32>
    %332 = vector.shape_cast %331 : vector<1x64x32xf32> to vector<64x32xf32>
    %cst_130 = arith.constant dense<0.000000e+00> : vector<16x32xf32>
    %333 = tpu.matmul %330, %332, %cst_130 {dimension_numbers = #tpu.dot_dimension_numbers<[1], [0], [0], [1], [0, 0, 1, 1], [], []>} : vector<16x64xf32>, vector<64x32xf32>, vector<16x32xf32> -> vector<16x32xf32>
    %334 = vector.broadcast %207 : vector<1x32xf32> to vector<16x32xf32>
    %335 = arith.addf %333, %334 : vector<16x32xf32>
    %336 = arith.addf %321, %335 : vector<16x32xf32>
    %cst_131 = arith.constant dense<0.000000e+00> : vector<16xf32>
    %337 = vector.multi_reduction <add>, %336, %cst_131 [1] : vector<16x32xf32> to vector<16xf32>
    %338 = vector.shape_cast %337 : vector<16xf32> to vector<16x1xf32>
    %cst_132 = arith.constant 3.200000e+01 : f32
    %339 = vector.broadcast %cst_132 : f32 to vector<16x1xf32>
    %340 = arith.divf %338, %339 : vector<16x1xf32>
    %341 = vector.broadcast %340 : vector<16x1xf32> to vector<16x32xf32>
    %342 = arith.subf %336, %341 : vector<16x32xf32>
    %343 = arith.mulf %342, %342 : vector<16x32xf32>
    %cst_133 = arith.constant dense<0.000000e+00> : vector<16xf32>
    %344 = vector.multi_reduction <add>, %343, %cst_133 [1] : vector<16x32xf32> to vector<16xf32>
    %345 = vector.shape_cast %344 : vector<16xf32> to vector<16x1xf32>
    %cst_134 = arith.constant 3.200000e+01 : f32
    %346 = vector.broadcast %cst_134 : f32 to vector<16x1xf32>
    %347 = arith.divf %345, %346 : vector<16x1xf32>
    %cst_135 = arith.constant 9.99999974E-6 : f32
    %348 = vector.broadcast %cst_135 : f32 to vector<16x1xf32>
    %349 = arith.addf %347, %348 : vector<16x1xf32>
    %350 = math.rsqrt %349 : vector<16x1xf32>
    %351 = vector.broadcast %350 : vector<16x1xf32> to vector<16x32xf32>
    %352 = arith.mulf %342, %351 : vector<16x32xf32>
    %353 = vector.broadcast %210 : vector<1x32xf32> to vector<16x32xf32>
    %354 = arith.mulf %352, %353 : vector<16x32xf32>
    %355 = vector.broadcast %211 : vector<1x32xf32> to vector<16x32xf32>
    %356 = arith.addf %354, %355 : vector<16x32xf32>
    %c0_136 = arith.constant 0 : index
    %c0_137 = arith.constant 0 : index
    %357 = vector.load %arg14[%c0_136, %c0_137] : memref<32x16xf32, #tpu.memory_space<vmem>>, vector<32x16xf32>
    %cst_138 = arith.constant dense<0.000000e+00> : vector<16x16xf32>
    %358 = tpu.matmul %356, %357, %cst_138 {dimension_numbers = #tpu.dot_dimension_numbers<[1], [0], [0], [1], [0, 0, 1, 1], [], []>} : vector<16x32xf32>, vector<32x16xf32>, vector<16x16xf32> -> vector<16x16xf32>
    %c0_139 = arith.constant 0 : index
    %c0_140 = arith.constant 0 : index
    %359 = vector.load %arg15[%c0_139, %c0_140] : memref<1x16xf32, #tpu.memory_space<vmem>>, vector<1x16xf32>
    %360 = vector.broadcast %359 : vector<1x16xf32> to vector<16x16xf32>
    %361 = arith.addf %358, %360 : vector<16x16xf32>
    %cst_141 = arith.constant 0.000000e+00 : f32
    %362 = vector.broadcast %cst_141 : f32 to vector<16x16xf32>
    %363 = arith.maximumf %361, %362 : vector<16x16xf32>
    %364 = vector.extract_strided_slice %363 {offsets = [0, 0], sizes = [8, 16], strides = [1, 1]} : vector<16x16xf32> to vector<8x16xf32>
    %365 = vector.extract_strided_slice %363 {offsets = [8, 0], sizes = [8, 16], strides = [1, 1]} : vector<16x16xf32> to vector<8x16xf32>
    %366 = arith.addf %364, %365 : vector<8x16xf32>
    %cst_142 = arith.constant 5.000000e-01 : f32
    %367 = vector.broadcast %cst_142 : f32 to vector<8x16xf32>
    %368 = arith.mulf %366, %367 : vector<8x16xf32>
    %c0_143 = arith.constant 0 : index
    %c0_144 = arith.constant 0 : index
    %c0_145 = arith.constant 0 : index
    %369 = vector.load %arg16[%c0_143, %c0_144, %c0_145] : memref<1x8x16xf32, #tpu.memory_space<vmem>>, vector<1x8x16xf32>
    %370 = vector.shape_cast %369 : vector<1x8x16xf32> to vector<8x16xf32>
    %371 = vector.shape_cast %368 : vector<8x16xf32> to vector<1x8x16xf32>
    tpu.vector_store %arg16[%c0_143, %c0_144, %c0_145], %371 {strides = array<i32>} : memref<1x8x16xf32, #tpu.memory_space<vmem>>, vector<1x8x16xf32>,
    return
  }
  func.func @transform_0(%arg0: i32) -> (i32, i32, i32) {
    %c0_i32 = arith.constant 0 : i32
    %c0_i32_0 = arith.constant 0 : i32
    %c0_i32_1 = arith.constant 0 : i32
    return %arg0, %c0_i32, %c0_i32_0 : i32, i32, i32
  }
  func.func @transform_1(%arg0: i32) -> (i32, i32) {
    %c0_i32 = arith.constant 0 : i32
    %c0_i32_0 = arith.constant 0 : i32
    %c0_i32_1 = arith.constant 0 : i32
    return %c0_i32, %c0_i32_0 : i32, i32
  }
  func.func @transform_2(%arg0: i32) -> (i32, i32, i32) {
    %c0_i32 = arith.constant 0 : i32
    %c0_i32_0 = arith.constant 0 : i32
    %c0_i32_1 = arith.constant 0 : i32
    %c0_i32_2 = arith.constant 0 : i32
    return %c0_i32, %c0_i32_0, %c0_i32_1 : i32, i32, i32
  }
  func.func @transform_3(%arg0: i32) -> (i32, i32) {
    %c0_i32 = arith.constant 0 : i32
    %c0_i32_0 = arith.constant 0 : i32
    %c0_i32_1 = arith.constant 0 : i32
    return %c0_i32, %c0_i32_0 : i32, i32
  }
  func.func @transform_4(%arg0: i32) -> (i32, i32) {
    %c0_i32 = arith.constant 0 : i32
    %c0_i32_0 = arith.constant 0 : i32
    %c0_i32_1 = arith.constant 0 : i32
    return %c0_i32, %c0_i32_0 : i32, i32
  }
  func.func @transform_5(%arg0: i32) -> (i32, i32) {
    %c0_i32 = arith.constant 0 : i32
    %c0_i32_0 = arith.constant 0 : i32
    %c0_i32_1 = arith.constant 0 : i32
    return %c0_i32, %c0_i32_0 : i32, i32
  }
  func.func @transform_6(%arg0: i32) -> (i32, i32, i32) {
    %c0_i32 = arith.constant 0 : i32
    %c0_i32_0 = arith.constant 0 : i32
    %c0_i32_1 = arith.constant 0 : i32
    %c0_i32_2 = arith.constant 0 : i32
    return %c0_i32, %c0_i32_0, %c0_i32_1 : i32, i32, i32
  }
  func.func @transform_7(%arg0: i32) -> (i32, i32, i32) {
    %c0_i32 = arith.constant 0 : i32
    %c0_i32_0 = arith.constant 0 : i32
    %c0_i32_1 = arith.constant 0 : i32
    %c0_i32_2 = arith.constant 0 : i32
    return %c0_i32, %c0_i32_0, %c0_i32_1 : i32, i32, i32
  }
  func.func @transform_8(%arg0: i32) -> (i32, i32, i32) {
    %c0_i32 = arith.constant 0 : i32
    %c0_i32_0 = arith.constant 0 : i32
    %c0_i32_1 = arith.constant 0 : i32
    %c0_i32_2 = arith.constant 0 : i32
    return %c0_i32, %c0_i32_0, %c0_i32_1 : i32, i32, i32
  }
  func.func @transform_9(%arg0: i32) -> (i32, i32, i32) {
    %c0_i32 = arith.constant 0 : i32
    %c0_i32_0 = arith.constant 0 : i32
    %c0_i32_1 = arith.constant 0 : i32
    %c0_i32_2 = arith.constant 0 : i32
    return %c0_i32, %c0_i32_0, %c0_i32_1 : i32, i32, i32
  }
  func.func @transform_10(%arg0: i32) -> (i32, i32, i32) {
    %c0_i32 = arith.constant 0 : i32
    %c0_i32_0 = arith.constant 0 : i32
    %c0_i32_1 = arith.constant 0 : i32
    %c0_i32_2 = arith.constant 0 : i32
    return %c0_i32, %c0_i32_0, %c0_i32_1 : i32, i32, i32
  }
  func.func @transform_11(%arg0: i32) -> (i32, i32, i32) {
    %c0_i32 = arith.constant 0 : i32
    %c0_i32_0 = arith.constant 0 : i32
    %c0_i32_1 = arith.constant 0 : i32
    %c0_i32_2 = arith.constant 0 : i32
    return %c0_i32, %c0_i32_0, %c0_i32_1 : i32, i32, i32
  }
  func.func @transform_12(%arg0: i32) -> (i32, i32, i32) {
    %c0_i32 = arith.constant 0 : i32
    %c0_i32_0 = arith.constant 0 : i32
    %c0_i32_1 = arith.constant 0 : i32
    %c0_i32_2 = arith.constant 0 : i32
    return %c0_i32, %c0_i32_0, %c0_i32_1 : i32, i32, i32
  }
  func.func @transform_13(%arg0: i32) -> (i32, i32) {
    %c0_i32 = arith.constant 0 : i32
    %c0_i32_0 = arith.constant 0 : i32
    %c0_i32_1 = arith.constant 0 : i32
    return %c0_i32, %c0_i32_0 : i32, i32
  }
  func.func @transform_14(%arg0: i32) -> (i32, i32) {
    %c0_i32 = arith.constant 0 : i32
    %c0_i32_0 = arith.constant 0 : i32
    %c0_i32_1 = arith.constant 0 : i32
    return %c0_i32, %c0_i32_0 : i32, i32
  }
  func.func @transform_15(%arg0: i32) -> (i32, i32, i32) {
    %c0_i32 = arith.constant 0 : i32
    %c0_i32_0 = arith.constant 0 : i32
    %c0_i32_1 = arith.constant 0 : i32
    return %arg0, %c0_i32, %c0_i32_0 : i32, i32, i32
  }
}

</mosaic_0001>

<bundles_post_ra>
// kernel: tile.8
= control target key start
LH: loop header
LB: loop body
LE: loop exit
PB: predicated region body
PF: predicated region fallthrough
CT: control target
= control target key end

     0   :  { %s154_s0 = inlined_call_operand.vmem [shape: f32[8,8], index: 0, kind: input, shape index: {}]   ;;  %s155_s1 = inlined_call_operand.vmem [shape: f32[2,8,2,8], index: 1, kind: output, shape index: {}]  }
   0x1   :  { %v4_v0 = vld [vmem:[%s154_s0] ss:$0 sm:$0xff]  ;;  %v51_v1 = vld [vmem:[%s154_s0 + $0x1] ss:$0 sm:$0xff]  ;;  %v54_v2 = vld [vmem:[%s154_s0 + $0x2] ss:$0 sm:$0xff] }
   0x2   :  { %5 = vst [vmem:[%s155_s1] sm:$0x3] %v4_v0  ;;  %50 = vst [vmem:[%s155_s1 + $0x10] sm:$0x3] %v4_v0  ;;  %v57_v3 = vld [vmem:[%s154_s0 + $0x3] ss:$0 sm:$0xff] }
   0x3   :  { %52 = vst [vmem:[%s155_s1 + $0x2] sm:$0x3] %v51_v1  ;;  %53 = vst [vmem:[%s155_s1 + $0x12] sm:$0x3] %v51_v1  ;;  %v60_v4 = vld [vmem:[%s154_s0 + $0x4] ss:$0 sm:$0xff] }
   0x4   :  { %55 = vst [vmem:[%s155_s1 + $0x4] sm:$0x3] %v54_v2  ;;  %56 = vst [vmem:[%s155_s1 + $0x14] sm:$0x3] %v54_v2  ;;  %v63_v5 = vld [vmem:[%s154_s0 + $0x5] ss:$0 sm:$0xff] }
   0x5   :  { %58 = vst [vmem:[%s155_s1 + $0x6] sm:$0x3] %v57_v3  ;;  %59 = vst [vmem:[%s155_s1 + $0x16] sm:$0x3] %v57_v3  ;;  %v66_v6 = vld [vmem:[%s154_s0 + $0x6] ss:$0 sm:$0xff] }
   0x6   :  { %61 = vst [vmem:[%s155_s1 + $0x8] sm:$0x3] %v60_v4  ;;  %62 = vst [vmem:[%s155_s1 + $0x18] sm:$0x3] %v60_v4  ;;  %v69_v7 = vld [vmem:[%s154_s0 + $0x7] ss:$0 sm:$0xff] }
   0x7   :  { %64 = vst [vmem:[%s155_s1 + $0xa] sm:$0x3] %v63_v5  ;;  %65 = vst [vmem:[%s155_s1 + $0x1a] sm:$0x3] %v63_v5 }
   0x8   :  { %67 = vst [vmem:[%s155_s1 + $0xc] sm:$0x3] %v66_v6  ;;  %68 = vst [vmem:[%s155_s1 + $0x1c] sm:$0x3] %v66_v6 }
   0x9   :  { %70 = vst [vmem:[%s155_s1 + $0xe] sm:$0x3] %v69_v7  ;;  %71 = vst [vmem:[%s155_s1 + $0x1e] sm:$0x3] %v69_v7 }

// kernel: tile.9
= control target key start
LH: loop header
LB: loop body
LE: loop exit
PB: predicated region body
PF: predicated region fallthrough
CT: control target
= control target key end

     0   :  { %vm82_vm0 = vcmask 1047556   ;;  %vm84_vm1 = vcmask 64512   ;;  %vm103_vm2 = vcmask 130112   ;;  %s225_s0 = inlined_call_operand.vmem [shape: f32[2,8,2,8], index: 0, kind: input, shape index: {}]   ;;  %s226_s1 = inlined_call_operand.vmem [shape: f32[16,16], index: 1, kind: output, shape index: {}]  }
   0x1   :  { %v138_v0 = vld [vmem:[%s225_s0 + $0xe] sm:$0x3]  ;;  %v139_v1 = vld [vmem:[%s225_s0 + $0xc] sm:$0x3]  ;;  %v140_v2 = vld [vmem:[%s225_s0 + $0xa] sm:$0x3] }
   0x2   :  { %48 = vst [vmem:[#allocation0 + $0x38] sm:$0x3] %v138_v0  ;;  %53 = vst [vmem:[#allocation0 + $0x30] sm:$0x3] %v139_v1  ;;  %v141_v3 = vld [vmem:[%s225_s0 + $0x8] sm:$0x3] }
   0x3   :  { %58 = vst [vmem:[#allocation0 + $0x28] sm:$0x3] %v140_v2  ;;  %v142_v4 = vld [vmem:[%s225_s0 + $0x6] sm:$0x3]  ;;  %v143_v5 = vld [vmem:[%s225_s0 + $0x4] sm:$0x3] }
   0x4   :  { %63 = vst [vmem:[#allocation0 + $0x20] sm:$0x3] %v141_v3  ;;  %68 = vst [vmem:[#allocation0 + $0x18] sm:$0x3] %v142_v4  ;;  %v144_v6 = vld [vmem:[%s225_s0 + $0x2] sm:$0x3] }
   0x5   :  { %73 = vst [vmem:[#allocation0 + $0x10] sm:$0x3] %v143_v5  ;;  %v78_v7 = vld [vmem:[%s225_s0] sm:$0x3]  ;;  %77 = vst [vmem:[#allocation0 + $0x8] sm:$0x3] %v144_v6 }
   0x6   :  { %79 = vst [vmem:[#allocation0] sm:$0x3] %v78_v7  ;;  %v130_v8 = vld [vmem:[%s225_s0 + $0x1e] sm:$0x3]  ;;  %v131_v9 = vld [vmem:[%s225_s0 + $0x1c] sm:$0x3] }
   0x7   :  { %v132_v10 = vld [vmem:[%s225_s0 + $0x1a] sm:$0x3]  ;;  %8 = vst [vmem:[#allocation0 + $0x78] sm:$0x3] %v130_v8  ;;  %13 = vst [vmem:[#allocation0 + $0x70] sm:$0x3] %v131_v9 }
   0x8   :  { %18 = vst [vmem:[#allocation0 + $0x68] sm:$0x3] %v132_v10  ;;  %v133_v11 = vld [vmem:[%s225_s0 + $0x18] sm:$0x3]  ;;  %v134_v12 = vld [vmem:[%s225_s0 + $0x16] sm:$0x3] }
   0x9   :  { %v135_v13 = vld [vmem:[%s225_s0 + $0x14] sm:$0x3]  ;;  %23 = vst [vmem:[#allocation0 + $0x60] sm:$0x3] %v133_v11  ;;  %28 = vst [vmem:[#allocation0 + $0x58] sm:$0x3] %v134_v12 }
   0xa   :  { %33 = vst [vmem:[#allocation0 + $0x50] sm:$0x3] %v135_v13  ;;  %v136_v14 = vld [vmem:[%s225_s0 + $0x12] sm:$0x3]  ;;  %v137_v15 = vld [vmem:[%s225_s0 + $0x10] sm:$0x3] }
   0xb   :  { %38 = vst [vmem:[#allocation0 + $0x48] sm:$0x3] %v136_v14  ;;  %43 = vst [vmem:[#allocation0 + $0x40] sm:$0x3] %v137_v15  ;;  %s148_s0 = smov 8  }
   0xc   :  { %v98_v16 = vld [vmem:[#allocation0 + $0x1] ss:$8 sm:$0xf0]   ;;  %v81_v17 = vld [vmem:[#allocation0] ss:$8 sm:$0xf0]  }
   0xd   :  { %v96_v18 = vld [vmem:[#allocation0 + $0x1] ss:$8 sm:$0xf]   ;;  %v80_v19 = vld [vmem:[#allocation0] ss:$8 sm:$0xf]  }
   0xe   :  { %v100_v20 = vsel %vm82_vm0, %v98_v16, %v96_v18  ;;  %v83_v21 = vsel %vm82_vm0, %v81_v17, %v80_v19 }
   0xf   :  { %101 = vrot.lane.b32.xlu0 %v100_v20, %s148_s0  ;;  %85 = vst.msk [vmem:[%s226_s1] sm:$0xff] %vm84_vm1, %v83_v21  }
  0x10   :  { %v108_v22 = vld [vmem:[#allocation0 + $0x41] ss:$8 sm:$0xf0]   ;;  %v89_v23 = vld [vmem:[#allocation0 + $0x40] ss:$8 sm:$0xf0]  }
  0x12   :  { %v106_v24 = vld [vmem:[#allocation0 + $0x41] ss:$8 sm:$0xf]   ;;  %v87_v25 = vld [vmem:[#allocation0 + $0x40] ss:$8 sm:$0xf]  }
  0x13   :  { %v110_v26 = vsel %vm82_vm0, %v108_v22, %v106_v24  ;;  %v91_v27 = vsel %vm82_vm0, %v89_v23, %v87_v25 }
  0x14   :  { %145 = vst.msk [vmem:[%s226_s1 + $0x8] sm:$0xff] %vm84_vm1, %v91_v27   ;;  %111 = vrot.lane.b32.xlu0 %v110_v26, %s148_s0 }
  0x81   :  { %v102_v28 = vpop.permute.xlu0 %101  }
  0x82   :  { %104 = vst.msk [vmem:[%s226_s1] sm:$0xff] %vm103_vm2, %v102_v28  }
  0x86   :  { %v112_v29 = vpop.permute.xlu0 %111  }
  0x87   :  { %146 = vst.msk [vmem:[%s226_s1 + $0x8] sm:$0xff] %vm103_vm2, %v112_v29  }

// kernel: encoder_forward.1
= control target key start
LH: loop header
LB: loop body
LE: loop exit
PB: predicated region body
PF: predicated region fallthrough
CT: control target
= control target key end

     0   :  { %s5589_s0 = inlined_call_operand.vmem [shape: s32[2,16,12], index: 0, kind: input, shape index: {}]   ;;  %s5590_s1 = inlined_call_operand.vmem [shape: f32[16,16], index: 1, kind: input, shape index: {}]   ;;  %s5591_s2 = inlined_call_operand.vmem [shape: f32[4,21,32], index: 2, kind: input, shape index: {}]   ;;  %s5592_s3 = inlined_call_operand.vmem [shape: f32[8,32], index: 3, kind: input, shape index: {}]   ;;  %s5593_s4 = inlined_call_operand.vmem [shape: f32[1,32], index: 4, kind: input, shape index: {}]   ;;  %s5594_s5 = inlined_call_operand.vmem [shape: f32[16,32], index: 5, kind: input, shape index: {}]   ;;  %s5595_s6 = inlined_call_operand.vmem [shape: f32[2,32,96], index: 6, kind: input, shape index: {}]   ;;  %s5596_s7 = inlined_call_operand.vmem [shape: f32[2,1,96], index: 7, kind: input, shape index: {}]   ;;  %s5597_s8 = inlined_call_operand.vmem [shape: f32[2,32,32], index: 8, kind: input, shape index: {}]   ;;  %s5598_s9 = inlined_call_operand.vmem [shape: f32[2,32,64], index: 9, kind: input, shape index: {}]   ;;  %s5599_s10 = inlined_call_operand.vmem [shape: f32[2,1,64], index: 10, kind: input, shape index: {}]   ;;  %s5600_s11 = inlined_call_operand.vmem [shape: f32[2,64,32], index: 11, kind: input, shape index: {}]   ;;  %s5601_s12 = inlined_call_operand.vmem [shape: f32[2,6,32], index: 12, kind: input, shape index: {}]   ;;  %s5602_s13 = inlined_call_operand.vmem [shape: f32[32,16], index: 13, kind: input, shape index: {}]   ;;  %s5603_s14 = inlined_call_operand.vmem [shape: f32[1,16], index: 14, kind: input, shape index: {}]   ;;  %s5604_s15 = inlined_call_operand.hbm [shape: f32[2,8,16], index: 15, kind: output, shape index: {}]  }
   0x1   :  { %5628 = sst [smem:[#allocation8_spill]] %s5589_s0 }
   0x2   :  { %5629 = sst [smem:[#allocation9_spill]] %s5590_s1 }
   0x3   :  { %20 = vsyncpa [#allocation3], 0 }
   0x4   :  { %22 = vsyncpa [#allocation3 + $0x1], 0  ;;  %s4911_s18 = smov 0   ;;  %s4913_s19 = smov 0  }
   0x5   :  { %s4915_s20 = smov 0   ;;  %s4917_s21 = smov 0  }
   0x6 LB: > { %5630 = sst [smem:[#allocation5_spill]] %s4805_s20  ;;  %s4932_s22 = sadd.s32 4294967295, %s4809_s21   ;;  %s4809_s21 = sphi %s4917_s21, %s5653_s21   ;;  %s4805_s20 = sphi %s4915_s20, %s5655_s20   ;;  %s4801_s19 = sphi %s4913_s19, %s5657_s19   ;;  %s4797_s18 = sphi %s4911_s18, %s5656_s18  }
   0x7   : > { %s3774_s23 = sadd.s32 4294967294, %s4809_s21   ;;  %s4936_s24 = sadd.s32 1, %s4809_s21  }
   0x8   : > { %5631 = sst [smem:[#allocation6_spill]] %s4936_s24  ;;  %s355_s25 = sadd.s32 1, %s4805_s20 }
   0x9   : > { %s352_s26 = ssub.s32 %s4809_s21, %s4936_s24  ;;  %p365_p0 = scmp.ne.s32.totalorder %s4805_s20, %s4801_s19 }
   0xa   : > { %p353_p1 = scmp.eq.s32.totalorder %s352_s26, 0  ;;  %p366_p2 = scmp.eq.s32.totalorder %s4932_s22, 1 }
   0xb   : > { %p371_p3 = scmp.ne.s32.totalorder %s4801_s19, %s4797_s18  ;;  %p372_p4 = scmp.eq.s32.totalorder %s3774_s23, 1 }
   0xc   : > { %s4947_s27 = scalar_select %p353_p1, %s4805_s20, %s355_s25  }
   0xd   : > { %p4949_p5 = por %p366_p2, %p365_p0  ;;  %p4953_p6 = por %p372_p4, %p371_p3 }
   0xe   : > { %5632 = sst [smem:[#allocation7_spill]] %s4947_s27  ;;  %p3777_p7 = scmp.ge.s32.totalorder %s4809_s21, 1 }
   0xf   : > { %p440_p8 = scmp.lt.s32.totalorder %s4809_s21, 3 }
  0x11   : > { %p441_p9 = pnand %p3777_p7, %p440_p8 }
  0x12   : > { %p488_p10 = scmp.lt.s32.totalorder (!%p441_p9), %s4932_s22, 1  ;;  %v512_v0 = vld [vmem:[%s5591_s2] sm:$0xff] (!%p441_p9)  ;;  %v4811_v1 = vmov (!%p441_p9), 8   ;;  %v4812_v2 = vmov (!%p441_p9), 9   ;;  %v513_v3 = vld [vmem:[%s5591_s2 + $0x8] sm:$0xff] (!%p441_p9)  ;;  %s5635_s0 = sld [smem:[#allocation8_spill]] (!%p441_p9)  ;;  %v498_v11 = vlaneseq (!%p441_p9) }
  0x13   : > { %444 = sbr.rel (%p441_p9) target bundleno = 7902 (0x1ede), region = 80  ;;  %4579 = vset.pattern.permute.xlu0 (!%p441_p9), %v4811_v1  ;;  %4580 = vset.pattern.permute.xlu1 (!%p441_p9), %v4812_v2  ;;  %v4329_v4 = vpack.c.bf16 (!%p441_p9), %v513_v3, %v512_v0  ;;  %v514_v7 = vld [vmem:[%s5591_s2 + $0x10] sm:$0x1f] (!%p441_p9)  ;;  %vm522_vm0 = vcmask (!%p441_p9), 1044480   ;;  %v497_v8 = vld [vmem:[%s5592_s3] sm:$0xff] (!%p441_p9)  ;;  %v4813_v9 = vmov (!%p441_p9), 10  }
  0x14   : > { %v4814_v10 = vmov (!%p441_p9), 11   ;;  %v4979_v12 = vand.u32 (!%p441_p9), 127, %v498_v11  ;;  %vm515_vm1 = vcmask (!%p441_p9), 171008   ;;  %v4815_v14 = vmov (!%p441_p9), 0.0   ;;  %v3790_v16 = vld [vmem:[%s5591_s2 + $0x18] sm:$0xff] (!%p441_p9)  ;;  %v3791_v17 = vld [vmem:[%s5591_s2 + $0x20] sm:$0xff] (!%p441_p9) }
  0x15   : > { %4330 = vmatprep.subr.bf16.mxu0 (!%p441_p9), %v4329_v4  ;;  %vm601_vm4 = vcmask (!%p441_p9), 64512   ;;  %v4333_v20 = vpack.c.bf16 (!%p441_p9), %v3791_v17, %v3790_v16  ;;  %v3792_v25 = vld [vmem:[%s5591_s2 + $0x28] sm:$0x1f] (!%p441_p9)  ;;  %v3798_v26 = vld [vmem:[%s5591_s2 + $0x30] sm:$0xff] (!%p441_p9)  ;;  %v3799_v27 = vld [vmem:[%s5591_s2 + $0x38] sm:$0xff] (!%p441_p9)  ;;  %vm1018_vm11 = vcmask (!%p441_p9), 261120  }
  0x16   : > { %4332 = vmatpush3.bf16.msra.mxu0 (!%p441_p9), %v4329_v4  ;;  %v4337_v30 = vpack.c.bf16 (!%p441_p9), %v3799_v27, %v3798_v26  ;;  %v3800_v34 = vld [vmem:[%s5591_s2 + $0x40] sm:$0x1f] (!%p441_p9)  ;;  %v3806_v35 = vld [vmem:[%s5591_s2 + $0x48] sm:$0xff] (!%p441_p9)  ;;  %v3807_v36 = vld [vmem:[%s5591_s2 + $0x50] sm:$0xff] (!%p441_p9)  ;;  %s5624_s17 = smov (!%p441_p9), 96   ;;  %s5638_s1 = sld [smem:[#allocation9_spill]] (!%p441_p9) }
  0x17   : > { %4065 = vmatprep.subr.msk.mxu0 (!%p441_p9), %vm522_vm0, %v514_v7  ;;  %v4341_v38 = vpack.c.bf16 (!%p441_p9), %v3807_v36, %v3806_v35  ;;  %v3808_v41 = vld [vmem:[%s5591_s2 + $0x58] sm:$0x1f] (!%p441_p9)  ;;  %v1007_v44 = vld [vmem:[%s5595_s6] sm:$0xff] (!%p441_p9)  ;;  %v1008_v45 = vld [vmem:[%s5595_s6 + $0x8] sm:$0xff] (!%p441_p9)  ;;  %vm1193_vm13 = vcmask (!%p441_p9), 130048   ;;  %s5621_s30 = smov (!%p441_p9), 64  }
  0x18   : > { %v4345_v46 = vpack.c.bf16 (!%p441_p9), %v1008_v45, %v1007_v44  ;;  %v1009_v47 = vld [vmem:[%s5595_s6 + $0x10] sm:$0xff] (!%p441_p9)  ;;  %v1010_v48 = vld [vmem:[%s5595_s6 + $0x18] sm:$0xff] (!%p441_p9)  ;;  %v3812_v50 = vld [vmem:[%s5593_s4] ss:$0 sm:$0xff] (!%p441_p9)  ;;  %s5620_s16 = smov (!%p441_p9), 80   ;;  %s5608_s23 = smov (!%p441_p9), 112  }
  0x19   : > { %v4349_v49 = vpack.c.bf16 (!%p441_p9), %v1010_v48, %v1009_v47  ;;  %v1000_v56 = vld [vmem:[%s5594_s5] sm:$0xff] (!%p441_p9)  ;;  %v1001_v57 = vld [vmem:[%s5594_s5 + $0x8] sm:$0xff] (!%p441_p9)  ;;  %vm5078_vm12 = vmpackc.low (!%p441_p9), %vm601_vm4, %vm601_vm4  ;;  %s5619_s20 = smov (!%p441_p9), 56   ;;  %s5610_s27 = smov (!%p441_p9), 48   ;;  %vm1943_vm14 = vcmask (!%p441_p9), 195584   ;;  %vm2182_vm15 = vcmask (!%p441_p9), 523264  }
  0x1a   : > { %s489_s25 = scalar_select %p488_p10, %s4932_s22, 1  ;;  %4066 = vmatpush3.msk.msra.mxu0 %vm522_vm0, %v514_v7  ;;  %4346 = vmatprep.subr.bf16.mxu1 %v4345_v46  ;;  %v3813_v61 = vld [vmem:[%s5596_s7] ss:$0 sm:$0xff] }
  0x1b   : > { %4070 = vmatprep.subr.mxu0 %v497_v8  ;;  %4348 = vmatpush3.bf16.msra.mxu1 %v4345_v46 }
  0x1c   : > { %s3911_s26 = sshll.u32 %s489_s25, 4  ;;  %4350 = vmatprep.subr.bf16.mxu1 %v4349_v49  ;;  %s5627_s25 = smov 88  }
  0x1d   : > { %s492_s24 = scalar_lea.vmem %s5635_s0, %s3911_s26  ;;  %s5622_s26 = smov 120  }
  0x1e   : > { %v493_v5 = vld [vmem:[%s492_s24] sm:$0xff]  ;;  %v494_v6 = vld [vmem:[%s492_s24 + $0x8] sm:$0xff]  ;;  %s5613_s24 = smov 72   ;;  %s5643_s0 = smov 80  }
  0x1f   : > { %501 = vperm.xlu0 %4579, %v493_v5   ;;  %684 = vperm.xlu1 %4580, %v493_v5   ;;  %v495_v19 = vcvt.s32.f32 %v493_v5  ;;  %v496_v23 = vcvt.s32.f32 %v494_v6 }
  0x20   : > { %4352 = vmatpush3.bf16.msra.mxu1 %v4349_v49 }
  0x23   : > { %504 = vperm.xlu0 %4579, %v494_v6   ;;  %687 = vperm.xlu1 %4580, %v494_v6  }
  0x27   : > { %4581 = vset.pattern.permute.xlu0 %v4813_v9  ;;  %4582 = vset.pattern.permute.xlu1 %v4813_v9  ;;  %v5091_v9 = vld [vmem:[%s5638_s1 + $0x8] sm:$0xff] }
  0x28   : > { %786 = vperm.xlu0 %4581, %v493_v5   ;;  %789 = vperm.xlu1 %4582, %v494_v6  }
  0x2c   : > { %4583 = vset.pattern.permute.xlu1 %v4814_v10  ;;  %4584 = vset.pattern.permute.xlu0 %v4814_v10 }
  0x2d   : > { %888 = vperm.xlu1 %4583, %v493_v5   ;;  %891 = vperm.xlu0 %4584, %v494_v6  }
  0x9e   : > { %v502_v13 = vpop.permute.xlu0 %501  ;;  %v685_v22 = vpop.permute.xlu1 %684 }
  0x9f   : > { %vm506_vm2 = vcmp.eq.s32.totalorder %v4979_v12, %v502_v13  ;;  %vm689_vm5 = vcmp.eq.s32.totalorder %v4979_v12, %v685_v22  ;;  %v5096_v13 = vld [vmem:[%s5638_s1] sm:$0xff] }
  0xa0   : > { %v3781_v15 = vsel %vm506_vm2, 1.0, %v4815_v14  ;;  %v3788_v24 = vsel %vm689_vm5, 1.0, %v4815_v14 }
  0xa1   : > { %4067 = vmatprep.mubr.msk.f32.mxu0 %vm515_vm1, %v3781_v15 }
  0xa2   : > { %v505_v18 = vpop.permute.xlu0 %504  ;;  %v688_v28 = vpop.permute.xlu1 %687 }
  0xa3   : > { %vm507_vm3 = vcmp.eq.s32.totalorder %v4979_v12, %v505_v18  ;;  %vm690_vm7 = vcmp.eq.s32.totalorder %v4979_v12, %v688_v28 }
  0xa4   : > { %v3782_v21 = vsel %vm507_vm3, 1.0, %v4815_v14  ;;  %v3789_v33 = vsel %vm690_vm7, 1.0, %v4815_v14 }
  0xa5   : > { %4068 = vmatmul.mubr.msk.f32.vlgmr.msra.gmra.mrb[0].mxu0 %vm515_vm1, %v3782_v21 }
  0xa6   : > { %4071 = vmatpush3.msra.mxu0 %v497_v8  ;;  %4072 = vmatprep.mubr.msk.f32.mxu0 %vm601_vm4, %v495_v19 }
  0xa7   : > { %4334 = vmatprep.subr.bf16.mxu0 %v4333_v20  ;;  %v787_v29 = vpop.permute.xlu0 %786  ;;  %v790_v31 = vpop.permute.xlu1 %789 }
  0xa8   : > { %vm791_vm6 = vcmp.eq.s32.totalorder %v4979_v12, %v787_v29  ;;  %vm792_vm8 = vcmp.eq.s32.totalorder %v4979_v12, %v790_v31 }
  0xa9   : > { %v3796_v32 = vsel %vm791_vm6, 1.0, %v4815_v14  ;;  %v3797_v39 = vsel %vm792_vm8, 1.0, %v4815_v14 }
  0xac   : > { %v889_v37 = vpop.permute.xlu1 %888  ;;  %v892_v42 = vpop.permute.xlu0 %891 }
  0xad   : > { %4073 = vmatmul.mubr.msk.f32.vlgmr.msra.gmra.mrb[0].mxu0 %vm601_vm4, %v496_v23  ;;  %vm893_vm9 = vcmp.eq.s32.totalorder %v4979_v12, %v889_v37  ;;  %vm894_vm10 = vcmp.eq.s32.totalorder %v4979_v12, %v892_v42 }
  0xae   : > { %4336 = vmatpush3.bf16.msra.mxu0 %v4333_v20  ;;  %4081 = vmatprep.mubr.msk.f32.mxu0 %vm515_vm1, %v3788_v24  ;;  %v3804_v40 = vsel %vm893_vm9, 1.0, %v4815_v14  ;;  %v3805_v43 = vsel %vm894_vm10, 1.0, %v4815_v14 }
  0xaf   : > { %4079 = vmatprep.subr.msk.mxu0 %vm522_vm0, %v3792_v25 }
  0xb2   : > { %4080 = vmatpush3.msk.msra.mxu0 %vm522_vm0, %v3792_v25 }
  0xb3   : > { %4338 = vmatprep.subr.bf16.mxu0 %v4337_v30 }
  0xb5   : > { %4082 = vmatmul.mubr.msk.f32.vlgmr.msra.gmra.mrb[0].mxu0 %vm515_vm1, %v3789_v33 }
  0xb6   : > { %4340 = vmatpush3.bf16.msra.mxu0 %v4337_v30  ;;  %4090 = vmatprep.mubr.msk.f32.mxu0 %vm515_vm1, %v3796_v32 }
  0xb7   : > { %4088 = vmatprep.subr.msk.mxu0 %vm522_vm0, %v3800_v34 }
  0xba   : > { %4089 = vmatpush3.msk.msra.mxu0 %vm522_vm0, %v3800_v34 }
  0xbb   : > { %4342 = vmatprep.subr.bf16.mxu0 %v4341_v38 }
  0xbd   : > { %4091 = vmatmul.mubr.msk.f32.vlgmr.msra.gmra.mrb[0].mxu0 %vm515_vm1, %v3797_v39 }
  0xbe   : > { %4344 = vmatpush3.bf16.msra.mxu0 %v4341_v38  ;;  %4099 = vmatprep.mubr.msk.f32.mxu0 %vm515_vm1, %v3804_v40 }
  0xbf   : > { %4097 = vmatprep.subr.msk.mxu0 %vm522_vm0, %v3808_v41 }
  0xc2   : > { %4098 = vmatpush3.msk.msra.mxu0 %vm522_vm0, %v3808_v41 }
  0xc5   : > { %4100 = vmatmul.mubr.msk.f32.vlgmr.msra.gmra.mrb[0].mxu0 %vm515_vm1, %v3805_v43 }
 0x198   : > { %v4101_v51 = vpop.f32.mrb[0].mxu0 }
 0x199   : > { %v997_v52 = vadd.f32 %v4101_v51, %v3812_v50  ;;  %v978_v53 = vpop.f32.mrb[1].mxu0 }
 0x19a   : > { %v996_v54 = vadd.f32 %v3812_v50, %v978_v53 }
 0x19b   : > { %v999_v55 = vmax.f32 %v997_v52, 0.0 }
 0x19c   : > { %v998_v58 = vmax.f32 %v996_v54, 0.0 }
 0x19d   : > { %v5055_v60 = vadd.f32 %v1001_v57, %v999_v55 }
 0x19e   : > { %v5053_v59 = vadd.f32 %v1000_v56, %v998_v58 }
 0x1a0   : > { %4110 = vmatprep.mubr.msk.f32.mxu1 %vm1018_vm11, %v5053_v59 }
 0x1a1   : > { %4111 = vmatmul.mubr.msk.f32.vlgmr.msra.gmra.mrb[0].mxu1 %vm1018_vm11, %v5055_v60 }
 0x274   : > { %v4112_v62 = vpop.f32.mrb[0].mxu1 }
 0x275   : > { %v5064_v63 = vadd.f32 %v4112_v62, %v3813_v61  ;;  %v1091_v0 = vpop.f32.mrb[1].mxu1 }
 0x276   : > { %v5066_v1 = vadd.f32 %v3813_v61, %v1091_v0 }
 0x278   : > { %4117 = vmatprep.mubr.msk.f32.mxu1 %vm601_vm4, %v5066_v1  ;;  %v5072_v2 = vpack.i.bf16 %v5064_v63, %v5066_v1 }
 0x27a   : > { %4586 = vrot.lane.b32.xlu1 %v5072_v2, %s5624_s17 }
 0x2ec   : > { %v4587_v3 = vpop.permute.xlu1 %4586 }
 0x2ed   : > { %v4589_v4 = vunpack.i.h.bf16 %v4587_v3  ;;  %v4588_v5 = vunpack.i.l.bf16 %v4587_v3 }
 0x2ef   : > { %v4353_v7 = vpack.c.bf16 %v4589_v4, %v4588_v5 }
 0x2f1   : > { %4355 = vmatprep.subr.msk.bf16.mxu1 %vm5078_vm12, %v4353_v7 }
 0x2f2   : > { %4358 = vmatpush3.bf16.xpose.msk.msra.mxu1 %vm5078_vm12, %v4353_v7 }
 0x2f9   : > { %4118 = vmatmul.mubr.msk.f32.vlgmr.msra.gmra.mrb[2].mxu1 %vm601_vm4, %v5064_v63 }
 0x3cc   : > { %v4119_v8 = vpop.f32.mrb[2].mxu1 }
 0x3cd   : > { %v1190_v10 = vmul.f32 0.35355338, %v4119_v8  ;;  %v1180_v12 = vpop.f32.mrb[3].mxu1 }
 0x3ce   : > { %v1189_v14 = vmul.f32 0.35355338, %v1180_v12 }
 0x3cf   : > { %v1192_v15 = vadd.f32 %v1190_v10, %v5091_v9 }
 0x3d0   : > { %v1191_v16 = vadd.f32 %v1189_v14, %v5096_v13 }
 0x3d1   : > { %v1197_v17 = vsel %vm1193_vm13, %v1192_v15, -inf }
 0x3d2   : > { %1198 = vmax.xlane.f32.xlu0 %v1197_v17  ;;  %v1194_v18 = vsel %vm1193_vm13, %v1191_v16, -inf }
 0x3d3   : > { %1195 = vmax.xlane.f32.xlu1 %v1194_v18 }
 0x45f   : > { %v1199_v19 = vpop.xlane.xlu0 %1198 }
 0x460   : > { %v1201_v20 = vsub.f32 %v1192_v15, %v1199_v19  ;;  %v1196_v21 = vpop.xlane.xlu1 %1195 }
 0x461   : > { %v1200_v22 = vsub.f32 %v1191_v16, %v1196_v21 }
 0x462   : > { %v1204_v23 = vmul.f32 1.442695, %v1201_v20 }
 0x463   : > { %v1202_v24 = vmul.f32 1.442695, %v1200_v22 }
 0x464   : > { %4665 = vpow2.f32 %v1204_v23 }
 0x465   : > { %4667 = vpow2.f32 %v1202_v24 }
 0x46e   : > { %v4666_v25 = vpop.eup %4665 }
 0x46f   : > { %v4668_v26 = vpop.eup %4667  ;;  %v1209_v27 = vsel %vm1193_vm13, %v4666_v25, 0.0 }
 0x470   : > { %1210 = vadd.xlane.f32.xlu1 %v1209_v27  ;;  %v1206_v28 = vsel %vm1193_vm13, %v4668_v26, 0.0 }
 0x471   : > { %1207 = vadd.xlane.f32.xlu0 %v1206_v28 }
 0x481   : > { %4596 = vrot.lane.b32.xlu1 %v5072_v2, %s5627_s25  ;;  %s5644_s25 = smov 56  }
 0x485   : > { %1303 = vrot.lane.b32.xlu1 %v5066_v1, %s5622_s26 }
 0x487   : > { %4591 = vrot.lane.b32.xlu0 %v5072_v2, %s5621_s30  ;;  %s5641_s30 = smov 120  }
 0x489   : > { %1305 = vrot.lane.b32.xlu1 %v5064_v63, %s5622_s26  ;;  %s5640_s26 = smov 96  }
 0x48b   : > { %4601 = vrot.lane.b32.xlu0 %v5072_v2, %s5620_s16  ;;  %s5642_s16 = smov 64  }
 0x48d   : > { %1509 = vrot.lane.b32.xlu1 %v5064_v63, %s5608_s23 }
 0x48f   : > { %1507 = vrot.lane.b32.xlu0 %v5066_v1, %s5608_s23  ;;  %s5611_s23 = smov 104  }
 0x4fd   : > { %v1211_v29 = vpop.xlane.xlu1 %1210 }
 0x4fe   : > { %4669 = vrcp.f32 %v1211_v29  ;;  %v1208_v30 = vpop.xlane.xlu0 %1207 }
 0x4ff   : > { %4671 = vrcp.f32 %v1208_v30 }
 0x501   : > { %v4597_v31 = vpop.permute.xlu1 %4596 }
 0x502   : > { %v4592_v32 = vpop.permute.xlu0 %4591  ;;  %v4599_v33 = vunpack.i.h.bf16 %v4597_v31  ;;  %v4598_v34 = vunpack.i.l.bf16 %v4597_v31 }
 0x503   : > { %v4594_v35 = vunpack.i.h.bf16 %v4592_v32  ;;  %v4593_v36 = vunpack.i.l.bf16 %v4592_v32 }
 0x504   : > { %v4363_v38 = vpack.c.bf16 %v4599_v33, %v4598_v34 }
 0x505   : > { %v4359_v37 = vpack.c.bf16 %v4594_v35, %v4593_v36  ;;  %v1304_v46 = vpop.permute.xlu1 %1303 }
 0x506   : > { %v4602_v41 = vpop.permute.xlu0 %4601 }
 0x507   : > { %4360 = vmatprep.subr.bf16.mxu1 %v4359_v37  ;;  %v4604_v44 = vunpack.i.h.bf16 %v4602_v41  ;;  %v4603_v45 = vunpack.i.l.bf16 %v4602_v41 }
 0x508   : > { %v4670_v39 = vpop.eup %4669  ;;  %4362 = vmatpush3.bf16.msra.mxu1 %v4359_v37 }
 0x509   : > { %v4672_v40 = vpop.eup %4671  ;;  %4365 = vmatprep.subr.msk.bf16.mxu1 %vm5078_vm12, %v4363_v38  ;;  %v1215_v43 = vmul.f32 %v4670_v39, %v4666_v25  ;;  %v4373_v47 = vpack.c.bf16 %v4604_v44, %v4603_v45  ;;  %v1306_v48 = vpop.permute.xlu1 %1305 }
 0x50a   : > { %v1214_v42 = vmul.f32 %v4672_v40, %v4668_v26  ;;  %v1508_v49 = vpop.permute.xlu0 %1507 }
 0x50c   : > { %4124 = vmatprep.mubr.msk.f32.mxu1 %vm1193_vm13, %v1214_v42 }
 0x50d   : > { %4125 = vmatmul.mubr.msk.f32.vlgmr.msra.gmra.mrb[4].mxu1 %vm1193_vm13, %v1215_v43  ;;  %v1510_v50 = vpop.permute.xlu1 %1509 }
 0x50e   : > { %4131 = vmatprep.mubr.msk.f32.mxu1 %vm601_vm4, %v1304_v46 }
 0x511   : > { %4368 = vmatpush3.bf16.xpose.msk.msra.mxu1 %vm5078_vm12, %v4363_v38 }
 0x512   : > { %4375 = vmatprep.subr.msk.bf16.mxu1 %vm5078_vm12, %v4373_v47 }
 0x518   : > { %4132 = vmatmul.mubr.msk.f32.vlgmr.msra.gmra.mrb[6].mxu1 %vm601_vm4, %v1306_v48 }
 0x519   : > { %4378 = vmatpush3.bf16.xpose.msk.msra.mxu1 %vm5078_vm12, %v4373_v47  ;;  %4145 = vmatprep.mubr.msk.f32.mxu1 %vm601_vm4, %v1508_v49 }
 0x520   : > { %4146 = vmatmul.mubr.msk.f32.vlgmr.msra.gmra.mrb[8].mxu1 %vm601_vm4, %v1510_v50 }
 0x5e0   : > { %v5132_v51 = vpop.f32.mrb[4].mxu1 }
 0x5e1   : > { %v5134_v52 = vpop.f32.mrb[5].mxu1 }
 0x5eb   : > { %v4133_v53 = vpop.f32.mrb[6].mxu1 }
 0x5ec   : > { %v1395_v54 = vmul.f32 0.35355338, %v4133_v53  ;;  %v1385_v55 = vpop.f32.mrb[7].mxu1 }
 0x5ed   : > { %v1394_v56 = vmul.f32 0.35355338, %v1385_v55 }
 0x5ee   : > { %v1397_v57 = vadd.f32 %v1395_v54, %v5091_v9 }
 0x5ef   : > { %v1396_v58 = vadd.f32 %v1394_v56, %v5096_v13 }
 0x5f0   : > { %v1401_v61 = vsel %vm1193_vm13, %v1397_v57, -inf }
 0x5f1   : > { %1402 = vmax.xlane.f32.xlu1 %v1401_v61  ;;  %v1398_v62 = vsel %vm1193_vm13, %v1396_v58, -inf }
 0x5f2   : > { %1399 = vmax.xlane.f32.xlu0 %v1398_v62 }
 0x5f3   : > { %v4147_v0 = vpop.f32.mrb[8].mxu1 }
 0x5f4   : > { %v1589_v3 = vpop.f32.mrb[9].mxu1  ;;  %v1599_v4 = vmul.f32 0.35355338, %v4147_v0 }
 0x5f5   : > { %v1598_v5 = vmul.f32 0.35355338, %v1589_v3 }
 0x5f6   : > { %v1601_v10 = vadd.f32 %v1599_v4, %v5091_v9 }
 0x5f7   : > { %v1600_v7 = vadd.f32 %v1598_v5, %v5096_v13 }
 0x5f8   : > { %v1605_v12 = vsel %vm1193_vm13, %v1601_v10, -inf }
 0x5f9   : > { %v1602_v8 = vsel %vm1193_vm13, %v1600_v7, -inf }
 0x5fa   : > { %1603 = vmax.xlane.f32.xlu0 %v1602_v8 }
 0x5fe   : > { %1606 = vmax.xlane.f32.xlu0 %v1605_v12 }
 0x602   : > { %4606 = vrot.lane.b32.xlu1 %v5072_v2, %s5619_s20  ;;  %s5645_s20 = smov 112  }
 0x67e   : > { %v1403_v14 = vpop.xlane.xlu1 %1402 }
 0x67f   : > { %v1405_v15 = vsub.f32 %v1397_v57, %v1403_v14  ;;  %v1400_v16 = vpop.xlane.xlu0 %1399 }
 0x680   : > { %v1404_v17 = vsub.f32 %v1396_v58, %v1400_v16 }
 0x681   : > { %v1408_v18 = vmul.f32 1.442695, %v1405_v15 }
 0x682   : > { %v1406_v19 = vmul.f32 1.442695, %v1404_v17  ;;  %v4607_v20 = vpop.permute.xlu1 %4606 }
 0x683   : > { %4673 = vpow2.f32 %v1408_v18  ;;  %v4609_v21 = vunpack.i.h.bf16 %v4607_v20  ;;  %v4608_v22 = vunpack.i.l.bf16 %v4607_v20 }
 0x684   : > { %4675 = vpow2.f32 %v1406_v19 }
 0x685   : > { %v4369_v23 = vpack.c.bf16 %v4609_v21, %v4608_v22 }
 0x687   : > { %4370 = vmatprep.subr.bf16.mxu0 %v4369_v23  ;;  %v1604_v24 = vpop.xlane.xlu0 %1603 }
 0x688   : > { %4372 = vmatpush3.bf16.msra.mxu0 %v4369_v23  ;;  %v1608_v34 = vsub.f32 %v1600_v7, %v1604_v24 }
 0x68a   : > { %v1610_v35 = vmul.f32 1.442695, %v1608_v34 }
 0x68b   : > { %v1607_v25 = vpop.xlane.xlu0 %1606 }
 0x68c   : > { %v1609_v26 = vsub.f32 %v1601_v10, %v1607_v25 }
 0x68d   : > { %v4674_v27 = vpop.eup %4673 }
 0x68e   : > { %v4676_v28 = vpop.eup %4675  ;;  %v1612_v29 = vmul.f32 1.442695, %v1609_v26  ;;  %v1413_v30 = vsel %vm1193_vm13, %v4674_v27, 0.0 }
 0x68f   : > { %1414 = vadd.xlane.f32.xlu0 %v1413_v30  ;;  %v1410_v31 = vsel %vm1193_vm13, %v4676_v28, 0.0 }
 0x690   : > { %4677 = vpow2.f32 %v1612_v29  ;;  %1411 = vadd.xlane.f32.xlu1 %v1410_v31 }
 0x691   : > { %4679 = vpow2.f32 %v1610_v35 }
 0x69a   : > { %v4678_v32 = vpop.eup %4677 }
 0x69b   : > { %v1617_v33 = vsel %vm1193_vm13, %v4678_v32, 0.0  ;;  %v4680_v36 = vpop.eup %4679 }
 0x69c   : > { %1618 = vadd.xlane.f32.xlu0 %v1617_v33  ;;  %v1614_v37 = vsel %vm1193_vm13, %v4680_v36, 0.0 }
 0x6a1   : > { %4616 = vrot.lane.b32.xlu1 %v5072_v2, %s5613_s24  ;;  %s5615_s24 = smov 16  }
 0x6b2   : > { %4611 = vrot.lane.b32.xlu0 %v5072_v2, %s5610_s27  ;;  %s5617_s27 = smov 8  }
 0x6b6   : > { %1713 = vrot.lane.b32.xlu0 %v5064_v63, %s5611_s23 }
 0x6c5   : > { %1615 = vadd.xlane.f32.xlu1 %v1614_v37  ;;  %v1947_v37 = vld [vmem:[%s5597_s8 + $0x8] sm:$0xff] }
 0x6d6   : > { %1711 = vrot.lane.b32.xlu1 %v5066_v1, %s5611_s23  ;;  %s5614_s23 = smov 40  }
 0x71c   : > { %v1415_v38 = vpop.xlane.xlu0 %1414 }
 0x71d   : > { %4681 = vrcp.f32 %v1415_v38  ;;  %v1412_v39 = vpop.xlane.xlu1 %1411  ;;  %v1948_v38 = vld [vmem:[%s5597_s8 + $0x10] sm:$0xff] }
 0x71e   : > { %4683 = vrcp.f32 %v1412_v39 }
 0x721   : > { %v4617_v45 = vpop.permute.xlu1 %4616 }
 0x722   : > { %v4619_v46 = vunpack.i.h.bf16 %v4617_v45  ;;  %v4618_v47 = vunpack.i.l.bf16 %v4617_v45 }
 0x724   : > { %v4383_v50 = vpack.c.bf16 %v4619_v46, %v4618_v47 }
 0x727   : > { %v4682_v40 = vpop.eup %4681 }
 0x728   : > { %v4684_v41 = vpop.eup %4683  ;;  %v1419_v44 = vmul.f32 %v4682_v40, %v4674_v27  ;;  %v1949_v40 = vld [vmem:[%s5597_s8 + $0x18] sm:$0xff] }
 0x729   : > { %v1619_v42 = vpop.xlane.xlu0 %1618  ;;  %v1418_v43 = vmul.f32 %v4684_v41, %v4676_v28  ;;  %v4397_v41 = vpack.c.bf16 %v1949_v40, %v1948_v38 }
 0x72a   : > { %4685 = vrcp.f32 %v1619_v42 }
 0x72b   : > { %4138 = vmatprep.mubr.msk.f32.mxu0 %vm1193_vm13, %v1418_v43 }
 0x72c   : > { %4139 = vmatmul.mubr.msk.f32.vlgmr.msra.gmra.mrb[2].mxu0 %vm1193_vm13, %v1419_v44 }
 0x72d   : > { %v4612_v63 = vpop.permute.xlu0 %4611 }
 0x72e   : > { %v4614_v48 = vunpack.i.h.bf16 %v4612_v63  ;;  %v4613_v49 = vunpack.i.l.bf16 %v4612_v63 }
 0x730   : > { %v4379_v1 = vpack.c.bf16 %v4614_v48, %v4613_v49 }
 0x731   : > { %v1714_v61 = vpop.permute.xlu0 %1713 }
 0x732   : > { %4380 = vmatprep.subr.bf16.mxu0 %v4379_v1 }
 0x733   : > { %4382 = vmatpush3.bf16.msra.mxu0 %v4379_v1 }
 0x734   : > { %4385 = vmatprep.subr.msk.bf16.mxu0 %vm5078_vm12, %v4383_v50  ;;  %v4686_v54 = vpop.eup %4685 }
 0x735   : > { %v1623_v57 = vmul.f32 %v4686_v54, %v4678_v32 }
 0x752   : > { %v1616_v53 = vpop.xlane.xlu1 %1615 }
 0x753   : > { %4687 = vrcp.f32 %v1616_v53 }
 0x756   : > { %v1712_v58 = vpop.permute.xlu1 %1711 }
 0x75d   : > { %v4688_v55 = vpop.eup %4687 }
 0x75e   : > { %v1622_v56 = vmul.f32 %v4688_v55, %v4680_v36 }
 0x760   : > { %4152 = vmatprep.mubr.msk.f32.mxu0 %vm1193_vm13, %v1622_v56  ;;  %v5207_v56 = vshrl.u32 %v498_v11, 7 }
 0x761   : > { %4153 = vmatmul.mubr.msk.f32.vlgmr.msra.gmra.mrb[4].mxu0 %vm1193_vm13, %v1623_v57 }
 0x762   : > { %4388 = vmatpush3.bf16.xpose.msk.msra.mxu0 %vm5078_vm12, %v4383_v50  ;;  %4159 = vmatprep.mubr.msk.f32.mxu0 %vm601_vm4, %v1712_v58  ;;  %v2066_v38 = vsub.s32 2, %v5207_v56 }
 0x769   : > { %4160 = vmatmul.mubr.msk.f32.vlgmr.msra.gmra.mrb[6].mxu0 %vm601_vm4, %v1714_v61 }
 0x7ff   : > { %v4140_v62 = vpop.f32.mrb[2].mxu0 }
 0x800   : > { %v1498_v0 = vpop.f32.mrb[3].mxu0 }
 0x834   : > { %v4154_v3 = vpop.f32.mrb[4].mxu0 }
 0x835   : > { %v1702_v4 = vpop.f32.mrb[5].mxu0 }
 0x83c   : > { %v4161_v5 = vpop.f32.mrb[6].mxu0 }
 0x83d   : > { %v1803_v7 = vmul.f32 0.35355338, %v4161_v5  ;;  %v1793_v8 = vpop.f32.mrb[7].mxu0 }
 0x83e   : > { %v1802_v10 = vmul.f32 0.35355338, %v1793_v8 }
 0x83f   : > { %v1805_v12 = vadd.f32 %v1803_v7, %v5091_v9 }
 0x840   : > { %v1804_v14 = vadd.f32 %v1802_v10, %v5096_v13 }
 0x841   : > { %v1809_v15 = vsel %vm1193_vm13, %v1805_v12, -inf }
 0x842   : > { %1810 = vmax.xlane.f32.xlu0 %v1809_v15  ;;  %v1806_v16 = vsel %vm1193_vm13, %v1804_v14, -inf }
 0x843   : > { %1807 = vmax.xlane.f32.xlu1 %v1806_v16 }
 0x8cf   : > { %v1811_v17 = vpop.xlane.xlu0 %1810 }
 0x8d0   : > { %v1813_v18 = vsub.f32 %v1805_v12, %v1811_v17  ;;  %v1808_v19 = vpop.xlane.xlu1 %1807 }
 0x8d1   : > { %v1812_v20 = vsub.f32 %v1804_v14, %v1808_v19  ;;  %v2077_v19 = vld [vmem:[%s5598_s9 + $0x8] sm:$0xff] }
 0x8d2   : > { %v1816_v21 = vmul.f32 1.442695, %v1813_v18 }
 0x8d3   : > { %v1814_v22 = vmul.f32 1.442695, %v1812_v20 }
 0x8d4   : > { %4689 = vpow2.f32 %v1816_v21  ;;  %v2078_v21 = vld [vmem:[%s5598_s9 + $0x10] sm:$0xff] }
 0x8d5   : > { %4691 = vpow2.f32 %v1814_v22  ;;  %v2079_v22 = vld [vmem:[%s5598_s9 + $0x18] sm:$0xff] }
 0x8de   : > { %v4690_v23 = vpop.eup %4689 }
 0x8df   : > { %v4692_v24 = vpop.eup %4691  ;;  %v1821_v25 = vsel %vm1193_vm13, %v4690_v23, 0.0 }
 0x8e0   : > { %1822 = vadd.xlane.f32.xlu1 %v1821_v25  ;;  %v1818_v26 = vsel %vm1193_vm13, %v4692_v24, 0.0  ;;  %v2171_v25 = vld [vmem:[%s5600_s11 + $0x8] sm:$0xff] }
 0x8e1   : > { %1819 = vadd.xlane.f32.xlu0 %v1818_v26  ;;  %v2172_v26 = vld [vmem:[%s5600_s11 + $0x10] sm:$0xff] }
 0x8f1   : > { %1917 = vrot.lane.b32.xlu1 %v1498_v0, %s5617_s27 }
 0x8f5   : > { %1919 = vrot.lane.b32.xlu1 %v4140_v62, %s5617_s27 }
 0x8f7   : > { %4621 = vrot.lane.b32.xlu0 %v5072_v2, %s5614_s23  ;;  %v1946_v2 = vld [vmem:[%s5597_s8] sm:$0xff]  ;;  %s5625_s23 = smov 24  }
 0x8f8   : > { %v4393_v39 = vpack.c.bf16 %v1947_v37, %v1946_v2 }
 0x8f9   : > { %1927 = vrot.lane.b32.xlu1 %v4154_v3, %s5615_s24 }
 0x8fb   : > { %1925 = vrot.lane.b32.xlu0 %v1702_v4, %s5615_s24 }
 0x96d   : > { %v1823_v27 = vpop.xlane.xlu1 %1822 }
 0x96e   : > { %4693 = vrcp.f32 %v1823_v27  ;;  %v1820_v28 = vpop.xlane.xlu0 %1819 }
 0x96f   : > { %4695 = vrcp.f32 %v1820_v28  ;;  %v2173_v28 = vld [vmem:[%s5600_s11 + $0x18] sm:$0xff] }
 0x971   : > { %v1918_v44 = vpop.permute.xlu1 %1917 }
 0x972   : > { %v4622_v29 = vpop.permute.xlu0 %4621  ;;  %v1939_v47 = vsel %vm601_vm4, %v5134_v52, %v1918_v44  ;;  %v1952_v52 = vsub.s32 0, %v5207_v56 }
 0x973   : > { %v4624_v30 = vunpack.i.h.bf16 %v4622_v29  ;;  %v4623_v31 = vunpack.i.l.bf16 %v4622_v29  ;;  %v4413_v29 = vpack.c.bf16 %v2173_v28, %v2172_v26  ;;  %v3850_v26 = vld [vmem:[%s5595_s6 + $0x30] sm:$0xff] }
 0x975   : > { %v4389_v32 = vpack.c.bf16 %v4624_v30, %v4623_v31  ;;  %v1920_v45 = vpop.permute.xlu1 %1919  ;;  %v2174_v30 = vld [vmem:[%s5600_s11 + $0x20] sm:$0xff]  ;;  %v2175_v31 = vld [vmem:[%s5600_s11 + $0x28] sm:$0xff] }
 0x976   : > { %v1926_v46 = vpop.permute.xlu0 %1925  ;;  %v1940_v49 = vsel %vm601_vm4, %v5132_v51, %v1920_v45  ;;  %v5213_v51 = vld [vmem:[%s5601_s12] sm:$0x3f] }
 0x977   : > { %4390 = vmatprep.subr.bf16.mxu1 %v4389_v32  ;;  %v1941_v1 = vsel %vm1193_vm13, %v1939_v47, %v1926_v46  ;;  %v1953_v57 = vrot.slane %v5213_v51, %v1952_v52  ;;  %v2067_v40 = vrot.slane %v5213_v51, %v2066_v38 }
 0x978   : > { %v4694_v33 = vpop.eup %4693  ;;  %4392 = vmatpush3.bf16.msra.mxu1 %v4389_v32  ;;  %v4417_v32 = vpack.c.bf16 %v2175_v31, %v2174_v30 }
 0x979   : > { %v4696_v34 = vpop.eup %4695  ;;  %v1827_v36 = vmul.f32 %v4694_v33, %v4690_v23  ;;  %4394 = vmatprep.subr.bf16.mxu1 %v4393_v39  ;;  %v1928_v63 = vpop.permute.xlu1 %1927  ;;  %v4405_v23 = vpack.c.bf16 %v2079_v22, %v2078_v21 }
 0x97a   : > { %v1826_v35 = vmul.f32 %v4696_v34, %v4692_v24  ;;  %v1942_v53 = vsel %vm1193_vm13, %v1940_v49, %v1928_v63  ;;  %v2170_v24 = vld [vmem:[%s5600_s11] sm:$0xff]  ;;  %v2176_v49 = vld [vmem:[%s5600_s11 + $0x30] sm:$0xff] }
 0x97b   : > { %v4409_v27 = vpack.c.bf16 %v2171_v25, %v2170_v24  ;;  %v3849_v24 = vld [vmem:[%s5595_s6 + $0x28] sm:$0xff] }
 0x97c   : > { %4166 = vmatprep.mubr.msk.f32.mxu1 %vm1193_vm13, %v1826_v35 }
 0x97d   : > { %4167 = vmatmul.mubr.msk.f32.vlgmr.msra.gmra.mrb[10].mxu1 %vm1193_vm13, %v1827_v36 }
 0x97e   : > { %4396 = vmatpush3.bf16.msra.mxu1 %v4393_v39  ;;  %v2072_v39 = vsub.s32 3, %v5207_v56 }
 0x97f   : > { %4398 = vmatprep.subr.bf16.mxu1 %v4397_v41 }
 0x982   : > { %4400 = vmatpush3.bf16.msra.mxu1 %v4397_v41 }
 0x983   : > { %4410 = vmatprep.subr.bf16.mxu1 %v4409_v27 }
 0xa50   : > { %v4168_v42 = vpop.f32.mrb[10].mxu1 }
 0xa51   : > { %1935 = vrot.lane.b32.xlu1 %v4168_v42, %s5625_s23  ;;  %v1906_v43 = vpop.f32.mrb[11].mxu1 }
 0xa52   : > { %1933 = vrot.lane.b32.xlu0 %v1906_v43, %s5625_s23  ;;  %v2073_v43 = vrot.slane %v5213_v51, %v2072_v39  ;;  %s5639_s23 = smov 88  }
 0xac3   : > { %v1936_v48 = vpop.permute.xlu1 %1935 }
 0xac4   : > { %v1934_v50 = vpop.permute.xlu0 %1933  ;;  %v1945_v55 = vsel %vm1943_vm14, %v1942_v53, %v1936_v48  ;;  %v3842_v53 = vld [vmem:[%s5599_s10] ss:$0 sm:$0xff] }
 0xac5   : > { %v1944_v54 = vsel %vm1943_vm14, %v1941_v1, %v1934_v50  ;;  %v2177_v1 = vld [vmem:[%s5600_s11 + $0x38] sm:$0xff] }
 0xac6   : > { %4177 = vmatprep.mubr.msk.f32.mxu1 %vm1018_vm11, %v1944_v54  ;;  %v4421_v50 = vpack.c.bf16 %v2177_v1, %v2176_v49 }
 0xac7   : > { %4178 = vmatmul.mubr.msk.f32.vlgmr.msra.gmra.mrb[12].mxu1 %vm1018_vm11, %v1945_v55 }
 0xac8   : > { %4412 = vmatpush3.bf16.msra.mxu1 %v4409_v27  ;;  %v3851_v27 = vld [vmem:[%s5595_s6 + $0x38] sm:$0xff] }
 0xac9   : > { %4414 = vmatprep.subr.bf16.mxu1 %v4413_v29  ;;  %v4429_v28 = vpack.c.bf16 %v3851_v27, %v3850_v26 }
 0xacc   : > { %4416 = vmatpush3.bf16.msra.mxu1 %v4413_v29 }
 0xacd   : > { %4418 = vmatprep.subr.bf16.mxu1 %v4417_v32 }
 0xad0   : > { %4420 = vmatpush3.bf16.msra.mxu1 %v4417_v32 }
 0xad1   : > { %4422 = vmatprep.subr.bf16.mxu1 %v4421_v50 }
 0xad4   : > { %4424 = vmatpush3.bf16.msra.mxu1 %v4421_v50 }
 0xb9a   : > { %v4179_v58 = vpop.f32.mrb[12].mxu1 }
 0xb9b   : > { %v2032_v61 = vadd.f32 %v4179_v58, %v1953_v57  ;;  %v2026_v62 = vpop.f32.mrb[13].mxu1 }
 0xb9c   : > { %v2027_v0 = vadd.f32 %v2026_v62, %v1953_v57 }
 0xb9d   : > { %v2036_v3 = vadd.f32 %v2032_v61, %v5055_v60 }
 0xb9e   : > { %v2035_v11 = vadd.f32 %v2027_v0, %v5053_v59  ;;  %v2076_v59 = vld [vmem:[%s5598_s9] sm:$0xff]  ;;  %v2180_v0 = vsub.s32 1, %v5207_v56 }
 0xb9f   : > { %v2040_v4 = vsel %vm1018_vm11, %v2036_v3, 0.0  ;;  %v4401_v20 = vpack.c.bf16 %v2077_v19, %v2076_v59 }
 0xba0   : > { %2041 = vadd.xlane.f32.xlu1 %v2040_v4  ;;  %v2037_v5 = vsel %vm1018_vm11, %v2035_v11, 0.0 }
 0xba1   : > { %2038 = vadd.xlane.f32.xlu0 %v2037_v5  ;;  %4402 = vmatprep.subr.bf16.mxu0 %v4401_v20 }
 0xba2   : > { %4404 = vmatpush3.bf16.msra.mxu0 %v4401_v20 }
 0xba3   : > { %4406 = vmatprep.subr.bf16.mxu0 %v4405_v23 }
 0xba6   : > { %4408 = vmatpush3.bf16.msra.mxu0 %v4405_v23  ;;  %v3848_v23 = vld [vmem:[%s5595_s6 + $0x20] sm:$0xff] }
 0xba7   : > { %v4425_v25 = vpack.c.bf16 %v3849_v24, %v3848_v23 }
 0xba9   : > { %4426 = vmatprep.subr.bf16.mxu0 %v4425_v25 }
 0xc2d   : > { %v2042_v7 = vpop.xlane.xlu1 %2041 }
 0xc2e   : > { %v2045_v8 = vmul.f32 0.03125, %v2042_v7  ;;  %v2039_v10 = vpop.xlane.xlu0 %2038 }
 0xc2f   : > { %v2044_v12 = vmul.f32 0.03125, %v2039_v10 }
 0xc30   : > { %v2047_v14 = vsub.f32 %v2036_v3, %v2045_v8  ;;  %v2181_v3 = vrot.slane %v5213_v51, %v2180_v0 }
 0xc31   : > { %v2046_v15 = vsub.f32 %v2035_v11, %v2044_v12 }
 0xc32   : > { %v2049_v18 = vmul.f32 %v2047_v14, %v2047_v14 }
 0xc33   : > { %v2048_v16 = vmul.f32 %v2046_v15, %v2046_v15 }
 0xc34   : > { %v2053_v60 = vsel %vm1018_vm11, %v2049_v18, 0.0 }
 0xc35   : > { %v2050_v17 = vsel %vm1018_vm11, %v2048_v16, 0.0 }
 0xc36   : > { %2051 = vadd.xlane.f32.xlu0 %v2050_v17 }
 0xc3a   : > { %2054 = vadd.xlane.f32.xlu0 %v2053_v60 }
 0xcc3   : > { %v2052_v33 = vpop.xlane.xlu0 %2051 }
 0xcc4   : > { %v2056_v34 = vmul.f32 0.03125, %v2052_v33 }
 0xcc6   : > { %v2058_v35 = vadd.f32 1e-05, %v2056_v34 }
 0xcc7   : > { %v2055_v36 = vpop.xlane.xlu0 %2054 }
 0xcc8   : > { %4697 = vrsqrt.f32 %v2058_v35  ;;  %v2057_v2 = vmul.f32 0.03125, %v2055_v36  ;;  %v2294_v35 = vsub.s32 4, %v5207_v56  ;;  %v2300_v36 = vsub.s32 5, %v5207_v56 }
 0xcca   : > { %v2059_v37 = vadd.f32 1e-05, %v2057_v2  ;;  %v2295_v2 = vrot.slane %v5213_v51, %v2294_v35 }
 0xccc   : > { %4699 = vrsqrt.f32 %v2059_v37 }
 0xcd2   : > { %v4698_v41 = vpop.eup %4697 }
 0xcd3   : > { %v2062_v42 = vmul.f32 %v4698_v41, %v2046_v15 }
 0xcd5   : > { %v2068_v44 = vmul.f32 %v2067_v40, %v2062_v42 }
 0xcd6   : > { %v4700_v45 = vpop.eup %4699 }
 0xcd7   : > { %v2063_v63 = vmul.f32 %v4700_v45, %v2047_v14  ;;  %v2074_v46 = vadd.f32 %v2073_v43, %v2068_v44 }
 0xcd9   : > { %v2069_v47 = vmul.f32 %v2067_v40, %v2063_v63  ;;  %4188 = vmatprep.mubr.msk.f32.mxu0 %vm1018_vm11, %v2074_v46 }
 0xcdb   : > { %v2075_v48 = vadd.f32 %v2073_v43, %v2069_v47  ;;  %v2301_v43 = vrot.slane %v5213_v51, %v2300_v36  ;;  %v3853_v47 = vld [vmem:[%s5596_s7 + $0x1] ss:$0 sm:$0xff] }
 0xcdd   : > { %4189 = vmatmul.mubr.msk.f32.vlgmr.msra.gmra.mrb[8].mxu0 %vm1018_vm11, %v2075_v48 }
 0xcde   : > { %4428 = vmatpush3.bf16.msra.mxu0 %v4425_v25 }
 0xcdf   : > { %4430 = vmatprep.subr.bf16.mxu0 %v4429_v28 }
 0xce2   : > { %4432 = vmatpush3.bf16.msra.mxu0 %v4429_v28 }
 0xdb0   : > { %v4190_v54 = vpop.f32.mrb[8].mxu0 }
 0xdb1   : > { %v2165_v55 = vadd.f32 %v4190_v54, %v3842_v53  ;;  %v2159_v57 = vpop.f32.mrb[9].mxu0 }
 0xdb2   : > { %v2160_v58 = vadd.f32 %v3842_v53, %v2159_v57 }
 0xdb3   : > { %v2169_v62 = vmax.f32 %v2165_v55, 0.0 }
 0xdb4   : > { %v2168_v61 = vmax.f32 %v2160_v58, 0.0 }
 0xdb6   : > { %4207 = vmatprep.mubr.msk.f32.mxu1 %vm2182_vm15, %v2168_v61 }
 0xdb7   : > { %4208 = vmatmul.mubr.msk.f32.vlgmr.msra.gmra.mrb[14].mxu1 %vm2182_vm15, %v2169_v62 }
 0xe8a   : > { %v4209_v11 = vpop.f32.mrb[14].mxu1 }
 0xe8b   : > { %v2261_v4 = vadd.f32 %v4209_v11, %v2181_v3  ;;  %v2255_v5 = vpop.f32.mrb[15].mxu1 }
 0xe8c   : > { %v2256_v7 = vadd.f32 %v2255_v5, %v2181_v3 }
 0xe8d   : > { %v2265_v8 = vadd.f32 %v2261_v4, %v2075_v48 }
 0xe8e   : > { %v2264_v10 = vadd.f32 %v2256_v7, %v2074_v46 }
 0xe8f   : > { %v2269_v12 = vsel %vm1018_vm11, %v2265_v8, 0.0 }
 0xe90   : > { %2270 = vadd.xlane.f32.xlu0 %v2269_v12  ;;  %v2266_v14 = vsel %vm1018_vm11, %v2264_v10, 0.0 }
 0xe91   : > { %2267 = vadd.xlane.f32.xlu1 %v2266_v14 }
 0xf1d   : > { %v2271_v15 = vpop.xlane.xlu0 %2270 }
 0xf1e   : > { %v2273_v16 = vmul.f32 0.03125, %v2271_v15  ;;  %v2268_v17 = vpop.xlane.xlu1 %2267 }
 0xf1f   : > { %v2272_v18 = vmul.f32 0.03125, %v2268_v17 }
 0xf20   : > { %v2275_v60 = vsub.f32 %v2265_v8, %v2273_v16 }
 0xf21   : > { %v2274_v59 = vsub.f32 %v2264_v10, %v2272_v18 }
 0xf22   : > { %v2277_v19 = vmul.f32 %v2275_v60, %v2275_v60 }
 0xf23   : > { %v2276_v20 = vmul.f32 %v2274_v59, %v2274_v59 }
 0xf24   : > { %v2281_v21 = vsel %vm1018_vm11, %v2277_v19, 0.0 }
 0xf25   : > { %2282 = vadd.xlane.f32.xlu0 %v2281_v21  ;;  %v2278_v22 = vsel %vm1018_vm11, %v2276_v20, 0.0 }
 0xf26   : > { %2279 = vadd.xlane.f32.xlu1 %v2278_v22 }
 0xfb2   : > { %v2283_v29 = vpop.xlane.xlu0 %2282 }
 0xfb3   : > { %v2285_v30 = vmul.f32 0.03125, %v2283_v29  ;;  %v2280_v31 = vpop.xlane.xlu1 %2279 }
 0xfb4   : > { %v2284_v32 = vmul.f32 0.03125, %v2280_v31 }
 0xfb5   : > { %v2287_v33 = vadd.f32 1e-05, %v2285_v30 }
 0xfb6   : > { %v2286_v34 = vadd.f32 1e-05, %v2284_v32 }
 0xfb7   : > { %4701 = vrsqrt.f32 %v2287_v33 }
 0xfb8   : > { %4703 = vrsqrt.f32 %v2286_v34 }
 0xfc1   : > { %v4702_v37 = vpop.eup %4701 }
 0xfc2   : > { %v4704_v40 = vpop.eup %4703  ;;  %v2291_v41 = vmul.f32 %v4702_v37, %v2275_v60 }
 0xfc3   : > { %v2290_v42 = vmul.f32 %v4704_v40, %v2274_v59 }
 0xfc4   : > { %v2297_v44 = vmul.f32 %v2295_v2, %v2291_v41 }
 0xfc5   : > { %v2296_v45 = vmul.f32 %v2295_v2, %v2290_v42 }
 0xfc6   : > { %v5305_v46 = vadd.f32 %v2301_v43, %v2297_v44 }
 0xfc7   : > { %v5303_v63 = vadd.f32 %v2301_v43, %v2296_v45 }
 0xfc9   : > { %4218 = vmatprep.mubr.msk.f32.mxu0 %vm1018_vm11, %v5303_v63 }
 0xfca   : > { %4219 = vmatmul.mubr.msk.f32.vlgmr.msra.gmra.mrb[10].mxu0 %vm1018_vm11, %v5305_v46 }
0x109d   : > { %v4220_v48 = vpop.f32.mrb[10].mxu0 }
0x109e   : > { %v5314_v49 = vadd.f32 %v4220_v48, %v3853_v47  ;;  %v2391_v51 = vpop.f32.mrb[11].mxu0 }
0x109f   : > { %v5316_v1 = vadd.f32 %v3853_v47, %v2391_v51 }
0x10a1   : > { %4225 = vmatprep.mubr.msk.f32.mxu0 %vm601_vm4, %v5316_v1  ;;  %v5322_v50 = vpack.i.bf16 %v5314_v49, %v5316_v1 }
0x10a3   : > { %4631 = vrot.lane.b32.xlu0 %v5322_v50, %s5639_s23  ;;  %4626 = vrot.lane.b32.xlu1 %v5322_v50, %s5640_s26  ;;  %s5646_s26 = smov 72  }
0x10a7   : > { %2602 = vrot.lane.b32.xlu1 %v5316_v1, %s5641_s30 }
0x10ab   : > { %2604 = vrot.lane.b32.xlu1 %v5314_v49, %s5641_s30  ;;  %s5647_s30 = smov 104  }
0x1115   : > { %v4632_v53 = vpop.permute.xlu0 %4631  ;;  %v4627_v54 = vpop.permute.xlu1 %4626 }
0x1116   : > { %v4634_v55 = vunpack.i.h.bf16 %v4632_v53  ;;  %v4633_v57 = vunpack.i.l.bf16 %v4632_v53  ;;  %v4629_v58 = vunpack.i.h.bf16 %v4627_v54  ;;  %v4628_v61 = vunpack.i.l.bf16 %v4627_v54 }
0x1118   : > { %v4433_v62 = vpack.c.bf16 %v4629_v58, %v4628_v61  ;;  %v4443_v3 = vpack.c.bf16 %v4634_v55, %v4633_v57 }
0x1119   : > { %v2603_v11 = vpop.permute.xlu1 %2602 }
0x111a   : > { %4435 = vmatprep.subr.msk.bf16.mxu0 %vm5078_vm12, %v4433_v62 }
0x111b   : > { %4438 = vmatpush3.bf16.xpose.msk.msra.mxu0 %vm5078_vm12, %v4433_v62 }
0x111c   : > { %4445 = vmatprep.subr.msk.bf16.mxu0 %vm5078_vm12, %v4443_v3 }
0x111d   : > { %v2605_v4 = vpop.permute.xlu1 %2604 }
0x1122   : > { %4226 = vmatmul.mubr.msk.f32.vlgmr.msra.gmra.mrb[12].mxu0 %vm601_vm4, %v5314_v49 }
0x1123   : > { %4448 = vmatpush3.bf16.xpose.msk.msra.mxu0 %vm5078_vm12, %v4443_v3  ;;  %4239 = vmatprep.mubr.msk.f32.mxu0 %vm601_vm4, %v2603_v11 }
0x112a   : > { %4240 = vmatmul.mubr.msk.f32.vlgmr.msra.gmra.mrb[14].mxu0 %vm601_vm4, %v2605_v4 }
0x11f5   : > { %v4227_v5 = vpop.f32.mrb[12].mxu0 }
0x11f6   : > { %v2490_v7 = vmul.f32 0.35355338, %v4227_v5  ;;  %v2480_v8 = vpop.f32.mrb[13].mxu0 }
0x11f7   : > { %v2489_v10 = vmul.f32 0.35355338, %v2480_v8 }
0x11f8   : > { %v2492_v12 = vadd.f32 %v2490_v7, %v5091_v9 }
0x11f9   : > { %v2491_v14 = vadd.f32 %v2489_v10, %v5096_v13 }
0x11fa   : > { %v2496_v15 = vsel %vm1193_vm13, %v2492_v12, -inf }
0x11fb   : > { %2497 = vmax.xlane.f32.xlu1 %v2496_v15  ;;  %v2493_v16 = vsel %vm1193_vm13, %v2491_v14, -inf }
0x11fc   : > { %2494 = vmax.xlane.f32.xlu0 %v2493_v16 }
0x11fd   : > { %v4241_v17 = vpop.f32.mrb[14].mxu0 }
0x11fe   : > { %v2684_v18 = vpop.f32.mrb[15].mxu0  ;;  %v2694_v60 = vmul.f32 0.35355338, %v4241_v17 }
0x11ff   : > { %v2693_v59 = vmul.f32 0.35355338, %v2684_v18 }
0x1200   : > { %v2696_v21 = vadd.f32 %v2694_v60, %v5091_v9 }
0x1201   : > { %v2695_v19 = vadd.f32 %v2693_v59, %v5096_v13 }
0x1202   : > { %v2700_v22 = vsel %vm1193_vm13, %v2696_v21, -inf }
0x1203   : > { %v2697_v20 = vsel %vm1193_vm13, %v2695_v19, -inf }
0x1204   : > { %2698 = vmax.xlane.f32.xlu0 %v2697_v20 }
0x1208   : > { %2701 = vmax.xlane.f32.xlu0 %v2700_v22 }
0x120c   : > { %4636 = vrot.lane.b32.xlu1 %v5322_v50, %s5642_s16  ;;  %s5648_s16 = smov 48  }
0x1288   : > { %v2498_v23 = vpop.xlane.xlu1 %2497 }
0x1289   : > { %v2500_v24 = vsub.f32 %v2492_v12, %v2498_v23  ;;  %v2495_v25 = vpop.xlane.xlu0 %2494 }
0x128a   : > { %v2499_v26 = vsub.f32 %v2491_v14, %v2495_v25 }
0x128b   : > { %v2503_v27 = vmul.f32 1.442695, %v2500_v24 }
0x128c   : > { %v2501_v28 = vmul.f32 1.442695, %v2499_v26  ;;  %v4637_v29 = vpop.permute.xlu1 %4636  ;;  %v4745_v26 = vld [vmem:[%s5638_s1 + $0x8] sm:$0xff] }
0x128d   : > { %4705 = vpow2.f32 %v2503_v27  ;;  %v4639_v13 = vunpack.i.h.bf16 %v4637_v29  ;;  %v4638_v30 = vunpack.i.l.bf16 %v4637_v29 }
0x128e   : > { %4707 = vpow2.f32 %v2501_v28  ;;  %v4746_v28 = vld [vmem:[%s5638_s1] sm:$0xff] }
0x128f   : > { %v4439_v31 = vpack.c.bf16 %v4639_v13, %v4638_v30 }
0x1291   : > { %4440 = vmatprep.subr.bf16.mxu1 %v4439_v31  ;;  %v2699_v9 = vpop.xlane.xlu0 %2698 }
0x1292   : > { %4442 = vmatpush3.bf16.msra.mxu1 %v4439_v31  ;;  %v2703_v44 = vsub.f32 %v2695_v19, %v2699_v9 }
0x1294   : > { %v2705_v45 = vmul.f32 1.442695, %v2703_v44 }
0x1295   : > { %v2702_v32 = vpop.xlane.xlu0 %2701 }
0x1296   : > { %v2704_v33 = vsub.f32 %v2696_v21, %v2702_v32 }
0x1297   : > { %v4706_v34 = vpop.eup %4705 }
0x1298   : > { %v4708_v2 = vpop.eup %4707  ;;  %v2707_v37 = vmul.f32 1.442695, %v2704_v33  ;;  %v2508_v40 = vsel %vm1193_vm13, %v4706_v34, 0.0 }
0x1299   : > { %2509 = vadd.xlane.f32.xlu0 %v2508_v40  ;;  %v2505_v41 = vsel %vm1193_vm13, %v4708_v2, 0.0 }
0x129a   : > { %4709 = vpow2.f32 %v2707_v37  ;;  %2506 = vadd.xlane.f32.xlu1 %v2505_v41 }
0x129b   : > { %4711 = vpow2.f32 %v2705_v45 }
0x12a4   : > { %v4710_v42 = vpop.eup %4709 }
0x12a5   : > { %v2712_v43 = vsel %vm1193_vm13, %v4710_v42, 0.0  ;;  %v4712_v47 = vpop.eup %4711 }
0x12a6   : > { %2713 = vadd.xlane.f32.xlu0 %v2712_v43  ;;  %v2709_v48 = vsel %vm1193_vm13, %v4712_v47, 0.0 }
0x12ab   : > { %4646 = vrot.lane.b32.xlu1 %v5322_v50, %s5643_s0  ;;  %s5649_s0 = smov 8  }
0x12bc   : > { %4641 = vrot.lane.b32.xlu0 %v5322_v50, %s5644_s25  ;;  %s5650_s25 = smov 40  }
0x12c0   : > { %2808 = vrot.lane.b32.xlu0 %v5314_v49, %s5645_s20 }
0x12cf   : > { %2710 = vadd.xlane.f32.xlu1 %v2709_v48 }
0x12e0   : > { %2806 = vrot.lane.b32.xlu1 %v5316_v1, %s5645_s20  ;;  %s5651_s20 = smov 16  }
0x1326   : > { %v2510_v51 = vpop.xlane.xlu0 %2509 }
0x1327   : > { %4713 = vrcp.f32 %v2510_v51  ;;  %v2507_v53 = vpop.xlane.xlu1 %2506 }
0x1328   : > { %4715 = vrcp.f32 %v2507_v53 }
0x132b   : > { %v4647_v62 = vpop.permute.xlu1 %4646 }
0x132c   : > { %v4649_v11 = vunpack.i.h.bf16 %v4647_v62  ;;  %v4648_v4 = vunpack.i.l.bf16 %v4647_v62 }
0x132e   : > { %v4453_v10 = vpack.c.bf16 %v4649_v11, %v4648_v4 }
0x1331   : > { %v4714_v54 = vpop.eup %4713 }
0x1332   : > { %v4716_v55 = vpop.eup %4715  ;;  %v2514_v61 = vmul.f32 %v4714_v54, %v4706_v34 }
0x1333   : > { %v2714_v57 = vpop.xlane.xlu0 %2713  ;;  %v2513_v58 = vmul.f32 %v4716_v55, %v4708_v2 }
0x1334   : > { %4717 = vrcp.f32 %v2714_v57 }
0x1335   : > { %4232 = vmatprep.mubr.msk.f32.mxu1 %vm1193_vm13, %v2513_v58 }
0x1336   : > { %4233 = vmatmul.mubr.msk.f32.vlgmr.msra.gmra.mrb[16].mxu1 %vm1193_vm13, %v2514_v61 }
0x1337   : > { %v4642_v3 = vpop.permute.xlu0 %4641 }
0x1338   : > { %v4644_v5 = vunpack.i.h.bf16 %v4642_v3  ;;  %v4643_v7 = vunpack.i.l.bf16 %v4642_v3 }
0x133a   : > { %v4449_v8 = vpack.c.bf16 %v4644_v5, %v4643_v7 }
0x133b   : > { %v2809_v60 = vpop.permute.xlu0 %2808 }
0x133c   : > { %4450 = vmatprep.subr.bf16.mxu1 %v4449_v8 }
0x133d   : > { %4452 = vmatpush3.bf16.msra.mxu1 %v4449_v8 }
0x133e   : > { %4455 = vmatprep.subr.msk.bf16.mxu1 %vm5078_vm12, %v4453_v10  ;;  %v4718_v14 = vpop.eup %4717 }
0x133f   : > { %v2718_v17 = vmul.f32 %v4718_v14, %v4710_v42 }
0x135c   : > { %v2711_v12 = vpop.xlane.xlu1 %2710 }
0x135d   : > { %4719 = vrcp.f32 %v2711_v12 }
0x1360   : > { %v2807_v18 = vpop.permute.xlu1 %2806 }
0x1367   : > { %v4720_v15 = vpop.eup %4719 }
0x1368   : > { %v2717_v16 = vmul.f32 %v4720_v15, %v4712_v47 }
0x136a   : > { %4246 = vmatprep.mubr.msk.f32.mxu1 %vm1193_vm13, %v2717_v16 }
0x136b   : > { %4247 = vmatmul.mubr.msk.f32.vlgmr.msra.gmra.mrb[18].mxu1 %vm1193_vm13, %v2718_v17 }
0x136c   : > { %4458 = vmatpush3.bf16.xpose.msk.msra.mxu1 %vm5078_vm12, %v4453_v10  ;;  %4253 = vmatprep.mubr.msk.f32.mxu1 %vm601_vm4, %v2807_v18 }
0x1373   : > { %4254 = vmatmul.mubr.msk.f32.vlgmr.msra.gmra.mrb[20].mxu1 %vm601_vm4, %v2809_v60 }
0x1409   : > { %v5376_v59 = vpop.f32.mrb[16].mxu1 }
0x140a   : > { %v5378_v19 = vpop.f32.mrb[17].mxu1 }
0x143e   : > { %v5380_v20 = vpop.f32.mrb[18].mxu1 }
0x143f   : > { %v5382_v21 = vpop.f32.mrb[19].mxu1 }
0x1446   : > { %v4255_v22 = vpop.f32.mrb[20].mxu1 }
0x1447   : > { %v2898_v23 = vmul.f32 0.35355338, %v4255_v22  ;;  %v2888_v24 = vpop.f32.mrb[21].mxu1 }
0x1448   : > { %v2897_v25 = vmul.f32 0.35355338, %v2888_v24 }
0x1449   : > { %v2900_v27 = vadd.f32 %v4745_v26, %v2898_v23 }
0x144a   : > { %v2899_v29 = vadd.f32 %v4746_v28, %v2897_v25 }
0x144b   : > { %v2904_v13 = vsel %vm1193_vm13, %v2900_v27, -inf }
0x144c   : > { %2905 = vmax.xlane.f32.xlu0 %v2904_v13  ;;  %v2901_v30 = vsel %vm1193_vm13, %v2899_v29, -inf }
0x144d   : > { %2902 = vmax.xlane.f32.xlu1 %v2901_v30 }
0x14d9   : > { %v2906_v31 = vpop.xlane.xlu0 %2905 }
0x14da   : > { %v2908_v9 = vsub.f32 %v2900_v27, %v2906_v31  ;;  %v2903_v32 = vpop.xlane.xlu1 %2902 }
0x14db   : > { %v2907_v33 = vsub.f32 %v2899_v29, %v2903_v32 }
0x14dc   : > { %v2911_v34 = vmul.f32 1.442695, %v2908_v9 }
0x14dd   : > { %v2909_v2 = vmul.f32 1.442695, %v2907_v33 }
0x14de   : > { %4721 = vpow2.f32 %v2911_v34  ;;  %v3881_v34 = vld [vmem:[%s5597_s8 + $0x28] sm:$0xff] }
0x14df   : > { %4723 = vpow2.f32 %v2909_v2  ;;  %v3882_v2 = vld [vmem:[%s5597_s8 + $0x30] sm:$0xff] }
0x14e8   : > { %v4722_v37 = vpop.eup %4721 }
0x14e9   : > { %v4724_v40 = vpop.eup %4723  ;;  %v2916_v41 = vsel %vm1193_vm13, %v4722_v37, 0.0 }
0x14ea   : > { %2917 = vadd.xlane.f32.xlu1 %v2916_v41  ;;  %v2913_v42 = vsel %vm1193_vm13, %v4724_v40, 0.0 }
0x14eb   : > { %2914 = vadd.xlane.f32.xlu0 %v2913_v42 }
0x14fb   : > { %4656 = vrot.lane.b32.xlu1 %v5322_v50, %s5646_s26 }
0x14ff   : > { %3010 = vrot.lane.b32.xlu1 %v5316_v1, %s5647_s30 }
0x1501   : > { %4651 = vrot.lane.b32.xlu0 %v5322_v50, %s5648_s16 }
0x1505   : > { %3012 = vrot.lane.b32.xlu0 %v5314_v49, %s5647_s30  ;;  %s485_s30 = sand.u32 1, %s4801_s19  }
0x1506   : > { %s3702_s16 = scalar_lea.sflag [#allocation3], %s485_s30 }
0x1577   : > { %v2918_v43 = vpop.xlane.xlu1 %2917 }
0x1578   : > { %4725 = vrcp.f32 %v2918_v43  ;;  %v2915_v44 = vpop.xlane.xlu0 %2914 }
0x1579   : > { %4727 = vrcp.f32 %v2915_v44 }
0x157b   : > { %v4657_v45 = vpop.permute.xlu1 %4656 }
0x157c   : > { %v4652_v47 = vpop.permute.xlu0 %4651  ;;  %v4659_v48 = vunpack.i.h.bf16 %v4657_v45  ;;  %v4658_v51 = vunpack.i.l.bf16 %v4657_v45 }
0x157d   : > { %v4654_v53 = vunpack.i.h.bf16 %v4652_v47  ;;  %v4653_v54 = vunpack.i.l.bf16 %v4652_v47 }
0x157e   : > { %v4463_v57 = vpack.c.bf16 %v4659_v48, %v4658_v51 }
0x157f   : > { %v4459_v55 = vpack.c.bf16 %v4654_v53, %v4653_v54  ;;  %v3011_v62 = vpop.permute.xlu1 %3010 }
0x1580   : > { %v3013_v3 = vpop.permute.xlu0 %3012 }
0x1581   : > { %4460 = vmatprep.subr.bf16.mxu0 %v4459_v55 }
0x1582   : > { %v4726_v1 = vpop.eup %4725  ;;  %4462 = vmatpush3.bf16.msra.mxu0 %v4459_v55 }
0x1583   : > { %v4728_v58 = vpop.eup %4727  ;;  %4465 = vmatprep.subr.msk.bf16.mxu0 %vm5078_vm12, %v4463_v57  ;;  %v2922_v61 = vmul.f32 %v4726_v1, %v4722_v37 }
0x1584   : > { %v2921_v49 = vmul.f32 %v4728_v58, %v4724_v40  ;;  %v3883_v40 = vld [vmem:[%s5597_s8 + $0x38] sm:$0xff] }
0x1585   : > { %v4477_v41 = vpack.c.bf16 %v3883_v40, %v3882_v2 }
0x1586   : > { %4260 = vmatprep.mubr.msk.f32.mxu0 %vm1193_vm13, %v2921_v49 }
0x1587   : > { %4261 = vmatmul.mubr.msk.f32.vlgmr.msra.gmra.mrb[16].mxu0 %vm1193_vm13, %v2922_v61 }
0x1588   : > { %4267 = vmatprep.mubr.msk.f32.mxu0 %vm601_vm4, %v3011_v62 }
0x158b   : > { %4468 = vmatpush3.bf16.xpose.msk.msra.mxu0 %vm5078_vm12, %v4463_v57 }
0x1592   : > { %4268 = vmatmul.mubr.msk.f32.vlgmr.msra.gmra.mrb[18].mxu0 %vm601_vm4, %v3013_v3 }
0x165a   : > { %v4262_v11 = vpop.f32.mrb[16].mxu0 }
0x165b   : > { %v3001_v4 = vpop.f32.mrb[17].mxu0 }
0x1665   : > { %v4269_v5 = vpop.f32.mrb[18].mxu0 }
0x1666   : > { %v3102_v7 = vmul.f32 0.35355338, %v4269_v5  ;;  %v3092_v8 = vpop.f32.mrb[19].mxu0 }
0x1667   : > { %v3101_v10 = vmul.f32 0.35355338, %v3092_v8 }
0x1668   : > { %v3104_v12 = vadd.f32 %v4745_v26, %v3102_v7 }
0x1669   : > { %v3103_v14 = vadd.f32 %v4746_v28, %v3101_v10 }
0x166a   : > { %v3108_v15 = vsel %vm1193_vm13, %v3104_v12, -inf }
0x166b   : > { %3109 = vmax.xlane.f32.xlu0 %v3108_v15  ;;  %v3105_v16 = vsel %vm1193_vm13, %v3103_v14, -inf }
0x166c   : > { %3106 = vmax.xlane.f32.xlu1 %v3105_v16 }
0x16f8   : > { %v3110_v17 = vpop.xlane.xlu0 %3109 }
0x16f9   : > { %v3112_v6 = vsub.f32 %v3104_v12, %v3110_v17  ;;  %v3107_v18 = vpop.xlane.xlu1 %3106 }
0x16fa   : > { %v3111_v60 = vsub.f32 %v3103_v14, %v3107_v18 }
0x16fb   : > { %v3115_v22 = vmul.f32 1.442695, %v3112_v6 }
0x16fc   : > { %v3113_v23 = vmul.f32 1.442695, %v3111_v60  ;;  %v3887_v60 = vld [vmem:[%s5598_s9 + $0x28] sm:$0xff] }
0x16fd   : > { %4729 = vpow2.f32 %v3115_v22 }
0x16fe   : > { %4731 = vpow2.f32 %v3113_v23  ;;  %v3888_v23 = vld [vmem:[%s5598_s9 + $0x30] sm:$0xff] }
0x1707   : > { %v4730_v24 = vpop.eup %4729 }
0x1708   : > { %v4732_v25 = vpop.eup %4731  ;;  %v3120_v27 = vsel %vm1193_vm13, %v4730_v24, 0.0 }
0x1709   : > { %3121 = vadd.xlane.f32.xlu1 %v3120_v27  ;;  %v3117_v26 = vsel %vm1193_vm13, %v4732_v25, 0.0  ;;  %v3894_v27 = vld [vmem:[%s5600_s11 + $0x40] sm:$0xff] }
0x170a   : > { %3118 = vadd.xlane.f32.xlu0 %v3117_v26  ;;  %v3895_v26 = vld [vmem:[%s5600_s11 + $0x48] sm:$0xff] }
0x171a   : > { %3216 = vrot.lane.b32.xlu1 %v5382_v21, %s5649_s0 }
0x171e   : > { %3218 = vrot.lane.b32.xlu1 %v5380_v20, %s5649_s0 }
0x1720   : > { %4661 = vrot.lane.b32.xlu0 %v5322_v50, %s5650_s25  ;;  %v3880_v50 = vld [vmem:[%s5597_s8 + $0x20] sm:$0xff]  ;;  %s5652_s25 = smov 24  }
0x1721   : > { %v4473_v37 = vpack.c.bf16 %v3881_v34, %v3880_v50 }
0x1722   : > { %3226 = vrot.lane.b32.xlu1 %v4262_v11, %s5651_s20 }
0x1724   : > { %3224 = vrot.lane.b32.xlu0 %v3001_v4, %s5651_s20  ;;  %s3908_s20 = sshll.u32 %s4932_s22, 7  ;;  %s4830_s22 = smov [#allocation2]  }
0x1725   : > { %s5546_s26 = scalar_lea.hbm %s5604_s15, %s3908_s20 }
0x1796   : > { %v3122_v28 = vpop.xlane.xlu1 %3121 }
0x1797   : > { %4733 = vrcp.f32 %v3122_v28  ;;  %v3119_v29 = vpop.xlane.xlu0 %3118  ;;  %v3896_v28 = vld [vmem:[%s5600_s11 + $0x50] sm:$0xff] }
0x1798   : > { %4735 = vrcp.f32 %v3119_v29  ;;  %v4489_v29 = vpack.c.bf16 %v3895_v26, %v3894_v27 }
0x179a   : > { %v3217_v44 = vpop.permute.xlu1 %3216 }
0x179b   : > { %v4662_v13 = vpop.permute.xlu0 %4661  ;;  %v3238_v51 = vsel %vm601_vm4, %v5378_v19, %v3217_v44  ;;  %v5451_v19 = vld [vmem:[%s5601_s12 + $0x8] sm:$0x3f] }
0x179c   : > { %v4664_v30 = vunpack.i.h.bf16 %v4662_v13  ;;  %v4663_v31 = vunpack.i.l.bf16 %v4662_v13  ;;  %v3897_v13 = vld [vmem:[%s5600_s11 + $0x58] sm:$0xff] }
0x179e   : > { %v4469_v9 = vpack.c.bf16 %v4664_v30, %v4663_v31  ;;  %v3219_v45 = vpop.permute.xlu1 %3218  ;;  %v4493_v30 = vpack.c.bf16 %v3897_v13, %v3896_v28  ;;  %v3898_v31 = vld [vmem:[%s5600_s11 + $0x60] sm:$0xff] }
0x179f   : > { %v3225_v48 = vpop.permute.xlu0 %3224  ;;  %v3239_v54 = vsel %vm601_vm4, %v5376_v59, %v3219_v45  ;;  %v3252_v59 = vrot.slane %v5451_v19, %v1952_v52 }
0x17a0   : > { %4470 = vmatprep.subr.bf16.mxu1 %v4469_v9  ;;  %v3240_v55 = vsel %vm1193_vm13, %v3238_v51, %v3225_v48 }
0x17a1   : > { %v4734_v21 = vpop.eup %4733  ;;  %4472 = vmatpush3.bf16.msra.mxu1 %v4469_v9  ;;  %v3899_v9 = vld [vmem:[%s5600_s11 + $0x68] sm:$0xff] }
0x17a2   : > { %v4736_v32 = vpop.eup %4735  ;;  %v3126_v33 = vmul.f32 %v4734_v21, %v4730_v24  ;;  %4474 = vmatprep.subr.bf16.mxu1 %v4473_v37  ;;  %v3227_v47 = vpop.permute.xlu1 %3226  ;;  %v3889_v24 = vld [vmem:[%s5598_s9 + $0x38] sm:$0xff]  ;;  %v4497_v21 = vpack.c.bf16 %v3899_v9, %v3898_v31  ;;  %v3595_v31 = vrot.slane %v5451_v19, %v2294_v35  ;;  %v3904_v35 = vld [vmem:[%s5603_s14] ss:$0 sm:$0xff] }
0x17a3   : > { %v3125_v20 = vmul.f32 %v4736_v32, %v4732_v25  ;;  %v3241_v1 = vsel %vm1193_vm13, %v3239_v54, %v3227_v47  ;;  %v4485_v25 = vpack.c.bf16 %v3889_v24, %v3888_v23  ;;  %v3606_v23 = vld [vmem:[%s5602_s13 + $0x10] sm:$0xff]  ;;  %v3607_v24 = vld [vmem:[%s5602_s13 + $0x18] sm:$0xff] }
0x17a5   : > { %4274 = vmatprep.mubr.msk.f32.mxu1 %vm1193_vm13, %v3125_v20 }
0x17a6   : > { %4275 = vmatmul.mubr.msk.f32.vlgmr.msra.gmra.mrb[22].mxu1 %vm1193_vm13, %v3126_v33 }
0x17a7   : > { %4476 = vmatpush3.bf16.msra.mxu1 %v4473_v37  ;;  %v3365_v37 = vrot.slane %v5451_v19, %v2066_v38  ;;  %v3900_v38 = vld [vmem:[%s5600_s11 + $0x70] sm:$0xff] }
0x17a8   : > { %4478 = vmatprep.subr.bf16.mxu1 %v4477_v41 }
0x17ab   : > { %4480 = vmatpush3.bf16.msra.mxu1 %v4477_v41 }
0x17ac   : > { %4490 = vmatprep.subr.bf16.mxu1 %v4489_v29 }
0x1879   : > { %v4276_v42 = vpop.f32.mrb[22].mxu1 }
0x187a   : > { %3234 = vrot.lane.b32.xlu1 %v4276_v42, %s5652_s25  ;;  %v3205_v43 = vpop.f32.mrb[23].mxu1  ;;  %v3371_v42 = vrot.slane %v5451_v19, %v2072_v39  ;;  %v3891_v39 = vld [vmem:[%s5599_s10 + $0x1] ss:$0 sm:$0xff] }
0x187b   : > { %3232 = vrot.lane.b32.xlu0 %v3205_v43, %s5652_s25  ;;  %s3778_s25 = sshll.u32 %s485_s30, 3 }
0x187c   : > { %s487_s24 = scalar_lea.vmem [#allocation2], %s3778_s25  ;;  %s4751_s25 = sshll.u32 %s4830_s22, 4  ;;  %s4752_s25 = int_to_ptr.vmem [resolvable:$false] %s4751_s25 }
0x187d   : > { %s3715_s27 = sshll.u32 %s487_s24, 4  ;;  %s4753_s1 = scalar_lea.vmem %s4752_s25, 256  ;;  %s5548_s27 = int_to_ptr.vmem [resolvable:$true] %s3715_s27 }
0x187e   : > { %s4747_s0 = scalar_lea.vmem %s5548_s27, 128  ;;  %p4754_p0 = scmp.lt.s32.totalorder %s5548_s27, %s4752_s25 }
0x187f   : > { %p4748_p11 = scmp.ne.s32.totalorder %s5548_s27, %s4747_s0  ;;  %p4755_p1 = scmp.lt.s32.totalorder %s4753_s1, %s4747_s0 }
0x1881   : > { %p4749_p12 = pnand %p4748_p11, %p4949_p5  ;;  %p4756_p2 = por %p4755_p1, %p4754_p0 }
0x1883   : > { %p4750_p13 = pneg %p4749_p12 }
0x1885   : > { %p4757_p3 = pnand %p4756_p2, %p4750_p13 }
0x18ec   : > { %v3235_v53 = vpop.permute.xlu1 %3234 }
0x18ed   : > { %v3233_v57 = vpop.permute.xlu0 %3232  ;;  %v3243_v49 = vsel %vm1943_vm14, %v3241_v1, %v3235_v53  ;;  %v3901_v53 = vld [vmem:[%s5600_s11 + $0x78] sm:$0xff] }
0x18ee   : > { %v3242_v58 = vsel %vm1943_vm14, %v3240_v55, %v3233_v57  ;;  %v4501_v54 = vpack.c.bf16 %v3901_v53, %v3900_v38 }
0x18ef   : > { %4285 = vmatprep.mubr.msk.f32.mxu1 %vm1018_vm11, %v3242_v58 }
0x18f0   : > { %4286 = vmatmul.mubr.msk.f32.vlgmr.msra.gmra.mrb[24].mxu1 %vm1018_vm11, %v3243_v49 }
0x18f1   : > { %4492 = vmatpush3.bf16.msra.mxu1 %v4489_v29 }
0x18f2   : > { %4494 = vmatprep.subr.bf16.mxu1 %v4493_v30 }
0x18f5   : > { %4496 = vmatpush3.bf16.msra.mxu1 %v4493_v30 }
0x18f6   : > { %4498 = vmatprep.subr.bf16.mxu1 %v4497_v21 }
0x18f9   : > { %4500 = vmatpush3.bf16.msra.mxu1 %v4497_v21 }
0x18fa   : > { %4502 = vmatprep.subr.bf16.mxu1 %v4501_v54 }
0x18fd   : > { %4504 = vmatpush3.bf16.msra.mxu1 %v4501_v54 }
0x19c3   : > { %v4287_v61 = vpop.f32.mrb[24].mxu1 }
0x19c4   : > { %v3331_v62 = vadd.f32 %v4287_v61, %v3252_v59  ;;  %v3325_v3 = vpop.f32.mrb[25].mxu1  ;;  %v3482_v61 = vrot.slane %v5451_v19, %v2180_v0 }
0x19c5   : > { %v3326_v11 = vadd.f32 %v3325_v3, %v3252_v59 }
0x19c6   : > { %v3335_v4 = vadd.f32 %v3331_v62, %v5305_v46 }
0x19c7   : > { %v3334_v5 = vadd.f32 %v3326_v11, %v5303_v63  ;;  %v3886_v63 = vld [vmem:[%s5598_s9 + $0x20] sm:$0xff] }
0x19c8   : > { %v3339_v7 = vsel %vm1018_vm11, %v3335_v4, 0.0  ;;  %v4481_v22 = vpack.c.bf16 %v3887_v60, %v3886_v63  ;;  %v3604_v63 = vld [vmem:[%s5602_s13] sm:$0xff]  ;;  %v3605_v60 = vld [vmem:[%s5602_s13 + $0x8] sm:$0xff] }
0x19c9   : > { %3340 = vadd.xlane.f32.xlu1 %v3339_v7  ;;  %v3336_v8 = vsel %vm1018_vm11, %v3334_v5, 0.0 }
0x19ca   : > { %3337 = vadd.xlane.f32.xlu0 %v3336_v8  ;;  %4482 = vmatprep.subr.bf16.mxu0 %v4481_v22 }
0x19cb   : > { %4484 = vmatpush3.bf16.msra.mxu0 %v4481_v22  ;;  %v4505_v22 = vpack.c.bf16 %v3605_v60, %v3604_v63 }
0x19cc   : > { %4486 = vmatprep.subr.bf16.mxu0 %v4485_v25 }
0x19cf   : > { %4488 = vmatpush3.bf16.msra.mxu0 %v4485_v25  ;;  %v4509_v25 = vpack.c.bf16 %v3607_v24, %v3606_v23 }
0x19d0   : > { %4506 = vmatprep.subr.bf16.mxu0 %v4505_v22 }
0x1a56   : > { %v3341_v10 = vpop.xlane.xlu1 %3340 }
0x1a57   : > { %v3343_v12 = vmul.f32 0.03125, %v3341_v10  ;;  %v3338_v14 = vpop.xlane.xlu0 %3337 }
0x1a58   : > { %v3342_v15 = vmul.f32 0.03125, %v3338_v14 }
0x1a59   : > { %v3345_v16 = vsub.f32 %v3335_v4, %v3343_v12 }
0x1a5a   : > { %v3344_v52 = vsub.f32 %v3334_v5, %v3342_v15 }
0x1a5b   : > { %v3347_v18 = vmul.f32 %v3345_v16, %v3345_v16 }
0x1a5c   : > { %v3346_v17 = vmul.f32 %v3344_v52, %v3344_v52 }
0x1a5d   : > { %v3351_v46 = vsel %vm1018_vm11, %v3347_v18, 0.0 }
0x1a5e   : > { %v3348_v6 = vsel %vm1018_vm11, %v3346_v17, 0.0 }
0x1a5f   : > { %3349 = vadd.xlane.f32.xlu0 %v3348_v6 }
0x1a63   : > { %3352 = vadd.xlane.f32.xlu0 %v3351_v46 }
0x1aec   : > { %v3350_v32 = vpop.xlane.xlu0 %3349 }
0x1aed   : > { %v3354_v20 = vmul.f32 0.03125, %v3350_v32 }
0x1aef   : > { %v3356_v33 = vadd.f32 1e-05, %v3354_v20 }
0x1af0   : > { %v3353_v50 = vpop.xlane.xlu0 %3352 }
0x1af1   : > { %4737 = vrsqrt.f32 %v3356_v33  ;;  %v3355_v34 = vmul.f32 0.03125, %v3353_v50  ;;  %v3601_v33 = vrot.slane %v5451_v19, %v2300_v36 }
0x1af3   : > { %v3357_v2 = vadd.f32 1e-05, %v3355_v34 }
0x1af5   : > { %4739 = vrsqrt.f32 %v3357_v2 }
0x1afb   : > { %v4738_v40 = vpop.eup %4737 }
0x1afc   : > { %v3360_v41 = vmul.f32 %v4738_v40, %v3344_v52 }
0x1afe   : > { %v3366_v43 = vmul.f32 %v3365_v37, %v3360_v41 }
0x1aff   : > { %v4740_v44 = vpop.eup %4739 }
0x1b00   : > { %v3361_v45 = vmul.f32 %v4740_v44, %v3345_v16  ;;  %v3372_v47 = vadd.f32 %v3371_v42, %v3366_v43 }
0x1b02   : > { %v3367_v48 = vmul.f32 %v3365_v37, %v3361_v45  ;;  %4296 = vmatprep.mubr.msk.f32.mxu0 %vm1018_vm11, %v3372_v47 }
0x1b04   : > { %v3373_v51 = vadd.f32 %v3371_v42, %v3367_v48 }
0x1b06   : > { %4297 = vmatmul.mubr.msk.f32.vlgmr.msra.gmra.mrb[20].mxu0 %vm1018_vm11, %v3373_v51 }
0x1b07   : > { %4508 = vmatpush3.bf16.msra.mxu0 %v4505_v22 }
0x1b08   : > { %4510 = vmatprep.subr.bf16.mxu0 %v4509_v25 }
0x1b0b   : > { %4512 = vmatpush3.bf16.msra.mxu0 %v4509_v25 }
0x1bd9   : > { %v4298_v55 = vpop.f32.mrb[20].mxu0 }
0x1bda   : > { %v3465_v57 = vadd.f32 %v4298_v55, %v3891_v39  ;;  %v3459_v1 = vpop.f32.mrb[21].mxu0 }
0x1bdb   : > { %v3460_v58 = vadd.f32 %v3891_v39, %v3459_v1 }
0x1bdc   : > { %v3469_v59 = vmax.f32 %v3465_v57, 0.0 }
0x1bdd   : > { %v3468_v49 = vmax.f32 %v3460_v58, 0.0 }
0x1bdf   : > { %4315 = vmatprep.mubr.msk.f32.mxu1 %vm2182_vm15, %v3468_v49 }
0x1be0   : > { %4316 = vmatmul.mubr.msk.f32.vlgmr.msra.gmra.mrb[26].mxu1 %vm2182_vm15, %v3469_v59 }
0x1cb3   : > { %v4317_v62 = vpop.f32.mrb[26].mxu1 }
0x1cb4   : > { %v3561_v3 = vadd.f32 %v4317_v62, %v3482_v61  ;;  %v3555_v11 = vpop.f32.mrb[27].mxu1 }
0x1cb5   : > { %v3556_v4 = vadd.f32 %v3555_v11, %v3482_v61 }
0x1cb6   : > { %v3565_v5 = vadd.f32 %v3561_v3, %v3373_v51 }
0x1cb7   : > { %v3564_v7 = vadd.f32 %v3556_v4, %v3372_v47 }
0x1cb8   : > { %v3569_v8 = vsel %vm1018_vm11, %v3565_v5, 0.0 }
0x1cb9   : > { %3570 = vadd.xlane.f32.xlu0 %v3569_v8  ;;  %v3566_v10 = vsel %vm1018_vm11, %v3564_v7, 0.0 }
0x1cba   : > { %3567 = vadd.xlane.f32.xlu1 %v3566_v10 }
0x1d46   : > { %v3571_v12 = vpop.xlane.xlu0 %3570 }
0x1d47   : > { %v3573_v14 = vmul.f32 0.03125, %v3571_v12  ;;  %v3568_v15 = vpop.xlane.xlu1 %3567 }
0x1d48   : > { %v3572_v16 = vmul.f32 0.03125, %v3568_v15 }
0x1d49   : > { %v3575_v52 = vsub.f32 %v3565_v5, %v3573_v14 }
0x1d4a   : > { %v3574_v17 = vsub.f32 %v3564_v7, %v3572_v16 }
0x1d4b   : > { %v3577_v6 = vmul.f32 %v3575_v52, %v3575_v52 }
0x1d4c   : > { %v3576_v0 = vmul.f32 %v3574_v17, %v3574_v17 }
0x1d4d   : > { %v3581_v18 = vsel %vm1018_vm11, %v3577_v6, 0.0 }
0x1d4e   : > { %3582 = vadd.xlane.f32.xlu0 %v3581_v18  ;;  %v3578_v46 = vsel %vm1018_vm11, %v3576_v0, 0.0 }
0x1d4f   : > { %3579 = vadd.xlane.f32.xlu1 %v3578_v46 }
0x1ddb   : > { %v3583_v27 = vpop.xlane.xlu0 %3582 }
0x1ddc   : > { %v3585_v26 = vmul.f32 0.03125, %v3583_v27  ;;  %v3580_v28 = vpop.xlane.xlu1 %3579 }
0x1ddd   : > { %v3584_v29 = vmul.f32 0.03125, %v3580_v28 }
0x1dde   : > { %v3587_v13 = vadd.f32 1e-05, %v3585_v26 }
0x1ddf   : > { %v3586_v30 = vadd.f32 1e-05, %v3584_v29 }
0x1de0   : > { %4741 = vrsqrt.f32 %v3587_v13 }
0x1de1   : > { %4743 = vrsqrt.f32 %v3586_v30 }
0x1dea   : > { %v4742_v9 = vpop.eup %4741 }
0x1deb   : > { %v4744_v21 = vpop.eup %4743  ;;  %v3591_v32 = vmul.f32 %v4742_v9, %v3575_v52 }
0x1dec   : > { %v3590_v20 = vmul.f32 %v4744_v21, %v3574_v17 }
0x1ded   : > { %v3597_v50 = vmul.f32 %v3595_v31, %v3591_v32 }
0x1dee   : > { %v3596_v34 = vmul.f32 %v3595_v31, %v3590_v20 }
0x1def   : > { %v3603_v37 = vadd.f32 %v3601_v33, %v3597_v50 }
0x1df0   : > { %v3602_v2 = vadd.f32 %v3601_v33, %v3596_v34 }
0x1df2   : > { %4326 = vmatprep.mubr.msk.f32.mxu0 %vm1018_vm11, %v3602_v2 }
0x1df3   : > { %4327 = vmatmul.mubr.msk.f32.vlgmr.msra.gmra.mrb[22].mxu0 %vm1018_vm11, %v3603_v37 }
0x1ec6   : > { %v4328_v40 = vpop.f32.mrb[22].mxu0 }
0x1ec7   : > { %v3693_v41 = vadd.f32 %v4328_v40, %v3904_v35  ;;  %v3687_v56 = vpop.f32.mrb[23].mxu0 }
0x1ec8   : > { %v3688_v36 = vadd.f32 %v3904_v35, %v3687_v56 }
0x1ec9   : > { %v3697_v19 = vmax.f32 %v3693_v41, 0.0 }
0x1eca   : > { %v3696_v42 = vmax.f32 %v3688_v36, 0.0 }
0x1ecc   : > { %v3698_v43 = vadd.f32 %v3697_v19, %v3696_v42 }
0x1ece   : > { %v3699_v44 = vmul.f32 0.5, %v3698_v43 }
0x1ed0   : > { %3700 = vst.msk [vmem:[%s487_s24] sm:$0xff] %vm1193_vm13, %v3699_v44 }
0x1ed1   : > { %4760 = shalt.err (!%p4757_p3)
}
0x1ed2   : > { %s4761_s30 = scalar_lea.hbm %s5546_s26, 128  ;;  %s4765_s17 = scalar_lea.hbm %s5604_s15, 256 }
0x1ed3   : > { %p4762_p4 = scmp.ne.s32.totalorder %s5546_s26, %s4761_s30  ;;  %p4766_p9 = scmp.lt.u32.totalorder %s5546_s26, %s5604_s15 }
0x1ed4   : > { %p4767_p10 = scmp.lt.u32.totalorder %s4765_s17, %s4761_s30  ;;  %p4769_p12 = scmp.lt.u32.totalorder %s4761_s30, %s5546_s26 }
0x1ed5   : > { %p4763_p7 = pnand %p4762_p4, %p4949_p5 }
0x1ed6   : > { %p4768_p11 = por %p4767_p10, %p4766_p9 }
0x1ed7   : > { %p4764_p8 = pneg %p4763_p7 }
0x1ed8   : > { %p4770_p13 = por %p4769_p12, %p4768_p11 }
0x1eda   : > { %p4771_p0 = pnand %p4770_p13, %p4764_p8 }
0x1edc   : > { %4774 = shalt.err (!%p4771_p0)
}
0x1edd   : > { %4521 = dma.vmem_to_hbm [thread:$0]  (%p4949_p5), %s5548_s27, 128, %s5546_s26, %s3702_s16  }
0x1ede PF: > { %p4527_p1 = scmp.ge.s32.totalorder %s4809_s21, 2  ;;  %s3727_s1 = sand.u32 1, %s4797_s18  }
0x1edf   : > { %s3728_s0 = scalar_lea.sflag [#allocation3], %s3727_s1 }
0x1ee0   : > { %p4524_p2 = pnand %p4527_p1, %p4953_p6 }
0x1ee2   : > { %4792 = dma.done.wait (!%p4524_p2), %s3728_s0, 128  }
0x1ee3   : > { %4794 = vsyncadd (!%p4524_p2), %s3728_s0, 4294967168  ;;  %s5653_s21 = sld [smem:[#allocation6_spill]]  ;;  %s5654_s25 = sld [smem:[#allocation5_spill]] }
0x1ee4   : > { %s5655_s20 = sld [smem:[#allocation7_spill]]  ;;  %s5656_s18 = smov %s4801_s19 }
0x1ee9   : > { %p25_p3 = scmp.ge.s32.totalorder %s5653_s21, 4   ;;  %s5657_s19 = smov %s5654_s25 }
0x1eeb   :  { %27 = sbr.rel (!%p25_p3) target bundleno = 6 (0x6), region = 125 }
0x1ef2   :  { %3733 = vsyncpa [#allocation3], 1 }
0x1ef3   :  { %3735 = vsyncpa [#allocation3 + $0x1], 1 }

</bundles_post_ra>
